<compile_context>
chip_gen: v7x
topology: tpu7x:2x2x1
jax: 0.10.0
libtpu: 0.0.40
codegen_flags: <defaults>
</compile_context>

<pallas_src>
import math
import functools

import jax
import jax.numpy as jnp
from jax.experimental import pallas as pl
from jax.experimental.pallas import tpu as pltpu

LN_EPS = 1e-5
NEG_INF = -1e30  # stays in f32 (do NOT cast masked scores to bf16 with this constant)


def _layernorm(x, gamma, beta):
    mu = jnp.mean(x, axis=-1, keepdims=True)
    var = jnp.mean((x - mu) ** 2, axis=-1, keepdims=True)
    return (x - mu) * jax.lax.rsqrt(var + LN_EPS) * gamma + beta


def _gelu_tanh(x):
    # GELU(approximate='tanh'): 0.5*x*(1 + tanh( sqrt(2/pi) * (x + 0.044715 x^3) ))
    c = math.sqrt(2.0 / math.pi)
    return 0.5 * x * (1.0 + jnp.tanh(c * (x + 0.044715 * x * x * x)))


def _vmem_capacity_bytes():
    try:
        return int(pltpu.get_tpu_info().vmem_capacity_bytes)
    except Exception:
        return 128 * 1024 * 1024  # conservative default (v5e/v6e-class part)


def _pick_tile(T, max_tile):
    cand = max_tile
    while cand >= 8:
        if cand <= T and T % cand == 0:
            return cand
        cand //= 2
    return T


# --------------------------------------------------------------------------
# Kernel 1: LN1 + QKV projection (one full-width matmul), grid = (B, T//tq)
# sm_scale is pre-folded into the Q columns of w_qkv / b_qkv on the host.
# --------------------------------------------------------------------------
def qkv_kernel(x_ref, ln1g_ref, ln1b_ref, w_qkv_ref, b_qkv_ref,
               q_ref, k_ref, v_ref, *, n_embd: int):
    C = n_embd
    x = x_ref[0].astype(jnp.float32)                                  # (tq, C)
    h = _layernorm(x, ln1g_ref[0], ln1b_ref[0]).astype(jnp.bfloat16)  # (tq, C) bf16

    # Single (tq, C) x (C, 3C) MXU matmul -> full-width output, f32 accumulation.
    qkv = jnp.dot(h, w_qkv_ref[...],
                  preferred_element_type=jnp.float32) + b_qkv_ref[0]  # (tq, 3C) f32

    q_ref[0] = qkv[:, 0 * C:1 * C].astype(q_ref.dtype)
    k_ref[0] = qkv[:, 1 * C:2 * C].astype(k_ref.dtype)
    v_ref[0] = qkv[:, 2 * C:3 * C].astype(v_ref.dtype)


# --------------------------------------------------------------------------
# Kernel 2: flash attention + attn proj + residual + LN2 + MLP + residual
#           grid = (B, T//tq, T//tk), kv axis innermost ("arbitrary")
# --------------------------------------------------------------------------
def attn_mlp_kernel(q_ref, k_ref, v_ref, x_ref,
                    w_apr_ref, b_apr_ref,
                    ln2g_ref, ln2b_ref,
                    w_fc_ref, b_fc_ref,
                    w_mpr_ref, b_mpr_ref,
                    o_ref,
                    m_sc, l_sc, acc_sc,
                    *, n_head: int, head_dim: int, tq: int, tk: int):
    i = pl.program_id(1)          # query tile index
    j = pl.program_id(2)          # key/value tile index
    nk = pl.num_programs(2)
    H, hd = n_head, head_dim

    @pl.when(j == 0)
    def _init():
        m_sc[...] = jnp.full_like(m_sc, -jnp.inf)
        l_sc[...] = jnp.zeros_like(l_sc)
        acc_sc[...] = jnp.zeros_like(acc_sc)

    # NOTE: the j==0 kv tile is always computed (never causally skipped), so every query
    # row sees at least one unmasked (finite) score before any fully-masked tile is hit.
    # This keeps m finite / l > 0 and makes the NEG_INF masking safe with online softmax.
    def flash_update(masked: bool):
        q_t = q_ref[0]            # (tq, C) bf16   (sm_scale already folded into Q)
        k_t = k_ref[0]            # (tk, C) bf16
        v_t = v_ref[0]            # (tk, C) bf16
        if masked:
            row = jax.lax.broadcasted_iota(jnp.int32, (tq, tk), 0) + i * tq
            col = jax.lax.broadcasted_iota(jnp.int32, (tq, tk), 1) + j * tk
            allowed = col <= row
        for h in range(H):        # short static loop; bounds (tq, tk) temporaries per head
            sl = slice(h * hd, (h + 1) * hd)
            s = jax.lax.dot_general(
                q_t[:, sl], k_t[:, sl], (((1,), (1,)), ((), ())),
                preferred_element_type=jnp.float32)               # (tq, tk) f32
            if masked:
                s = jnp.where(allowed, s, NEG_INF)
            m_prev = m_sc[h]                                       # (tq, 1)
            m_new = jnp.maximum(m_prev, jnp.max(s, axis=-1, keepdims=True))
            alpha = jnp.exp(m_prev - m_new)
            p = jnp.exp(s - m_new)                                 # (tq, tk) f32
            l_sc[h] = alpha * l_sc[h] + jnp.sum(p, axis=-1, keepdims=True)
            acc_sc[:, sl] = alpha * acc_sc[:, sl] + jnp.dot(
                p.astype(jnp.bfloat16), v_t[:, sl],
                preferred_element_type=jnp.float32)                # (tq, hd) f32
            m_sc[h] = m_new

    # Fully-unmasked tiles: no iota/compare/where work at all.
    @pl.when(j * tk + (tk - 1) <= i * tq)
    def _compute_unmasked():
        flash_update(masked=False)

    # Diagonal-straddling tiles: apply the causal mask.
    @pl.when(jnp.logical_and(j * tk + (tk - 1) > i * tq,
                             j * tk <= i * tq + (tq - 1)))
    def _compute_diag():
        flash_update(masked=True)

    # (Tiles with j*tk > i*tq + tq - 1 are fully in the future: no compute, and their
    #  K/V DMA is suppressed by the clamped BlockSpec index_map on the host side.)

    @pl.when(j == nk - 1)
    def _finalize():
        # Normalize per head; accumulator is already in packed (tq, C) layout.
        inv_l = pl.reciprocal(l_sc[...], approx=True)              # (H, tq, 1)
        for h in range(H):
            sl = slice(h * hd, (h + 1) * hd)
            acc_sc[:, sl] = acc_sc[:, sl] * inv_l[h]
        y = acc_sc[...].astype(jnp.bfloat16)                       # (tq, C)

        # Single full-width attention projection (tq,C)x(C,C) -> (tq,C).
        attn_out = jnp.dot(y, w_apr_ref[...],
                           preferred_element_type=jnp.float32) + b_apr_ref[0]

        x = x_ref[0].astype(jnp.float32)                           # (tq, C)
        x1 = x + attn_out                                          # residual 1

        h2 = _layernorm(x1, ln2g_ref[0], ln2b_ref[0]).astype(jnp.bfloat16)
        f = jnp.dot(h2, w_fc_ref[...],
                    preferred_element_type=jnp.float32) + b_fc_ref[0]   # (tq, 4C) f32
        g = _gelu_tanh(f).astype(jnp.bfloat16)
        mlp_out = jnp.dot(g, w_mpr_ref[...],
                          preferred_element_type=jnp.float32) + b_mpr_ref[0]

        o_ref[0] = (x1 + mlp_out).astype(o_ref.dtype)              # residual 2


def gpt2_block_pallas(x, params, n_head, *, tq=None, tk=None):
    B, T, C = x.shape
    assert C % n_head == 0
    H = n_head
    hd = C // H

    # Per-generation VMEM budget: leave ~25% headroom for compiler scratch / pipelining.
    vmem_cap = _vmem_capacity_bytes()
    vmem_limit = int(vmem_cap * 3 // 4)                 # ~96 MiB on v5e/v6e, ~48 MiB on v7x
    max_tile = 512 if vmem_cap >= 128 * 1024 * 1024 else 256

    tq = _pick_tile(T, max_tile) if tq is None else tq
    tk = tq if tk is None else tk
    assert T % tq == 0 and T % tk == 0
    nq, nkv = T // tq, T // tk

    f32, bf16 = jnp.float32, jnp.bfloat16
    sm_scale = 1.0 / math.sqrt(hd)

    # ---- host-side weight prep: bf16 MXU operands; fold sm_scale into the Q projection ----
    w_qkv = params['w_qkv']                                     # (C, 3C), (in, out)
    b_qkv = params['b_qkv'].reshape(1, 3 * C)
    w_qkv = jnp.concatenate([w_qkv[:, :C] * sm_scale, w_qkv[:, C:]], axis=1).astype(bf16)
    b_qkv = jnp.concatenate([b_qkv[:, :C] * sm_scale, b_qkv[:, C:]], axis=1).astype(f32)

    w_apr = params['w_apr'].astype(bf16)                        # (C, C)
    b_apr = params['b_apr'].reshape(1, C).astype(f32)
    w_fc = params['w_fc'].astype(bf16)                          # (C, 4C)
    b_fc = params['b_fc'].reshape(1, 4 * C).astype(f32)
    w_mpr = params['w_mpr'].astype(bf16)                        # (4C, C)
    b_mpr = params['b_mpr'].reshape(1, C).astype(f32)
    ln1_g = params['ln1_g'].reshape(1, C).astype(f32)
    ln1_b = params['ln1_b'].reshape(1, C).astype(f32)
    ln2_g = params['ln2_g'].reshape(1, C).astype(f32)
    ln2_b = params['ln2_b'].reshape(1, C).astype(f32)

    # -------------------- pallas_call 1: LN1 + QKV --------------------
    def full2(arr):
        nd = arr.ndim
        return pl.BlockSpec(arr.shape, lambda b, i, _nd=nd: (0,) * _nd)

    qkv_in_specs = [pl.BlockSpec((1, tq, C), lambda b, i: (b, i, 0)),
                    full2(ln1_g), full2(ln1_b), full2(w_qkv), full2(b_qkv)]
    qkv_out_spec = pl.BlockSpec((1, tq, C), lambda b, i: (b, i, 0))

    q, k, v = pl.pallas_call(
        functools.partial(qkv_kernel, n_embd=C),
        out_shape=[jax.ShapeDtypeStruct((B, T, C), bf16)] * 3,
        grid_spec=pltpu.PrefetchScalarGridSpec(
            num_scalar_prefetch=0,
            grid=(B, nq),
            in_specs=qkv_in_specs,
            out_specs=[qkv_out_spec] * 3,
        ),
        compiler_params=pltpu.CompilerParams(
            dimension_semantics=("parallel", "parallel"),
            vmem_limit_bytes=vmem_limit),
        cost_estimate=pl.CostEstimate(
            flops=2 * B * T * C * 3 * C,
            transcendentals=0,
            bytes_accessed=B * T * C * 4 + 3 * B * T * C * 2 + C * 3 * C * 2),
    )(x, ln1_g, ln1_b, w_qkv, b_qkv)

    # ------------- pallas_call 2: flash attention + MLP + residuals -------------
    def full3(arr):
        nd = arr.ndim
        return pl.BlockSpec(arr.shape, lambda b, i, j, _nd=nd: (0,) * _nd)

    # Clamp the KV block index for causally-skipped tiles so no DMA is issued for them.
    if tq == tk:
        def kv_index(b, i, j):
            return (b, jnp.minimum(j, i), 0)
    else:
        def kv_index(b, i, j):
            return (b, jnp.minimum(j, (i * tq + (tq - 1)) // tk), 0)

    q_spec = pl.BlockSpec((1, tq, C), lambda b, i, j: (b, i, 0))
    kv_spec = pl.BlockSpec((1, tk, C), kv_index)
    x_spec = pl.BlockSpec((1, tq, C), lambda b, i, j: (b, i, 0))

    attn_weights = [w_apr, b_apr, ln2_g, ln2_b, w_fc, b_fc, w_mpr, b_mpr]
    in_specs = [q_spec, kv_spec, kv_spec, x_spec] + [full3(w) for w in attn_weights]

    attn_flops = (4 * B * H * T * T * hd          # QK^T + PV (upper bound over causal)
                  + 2 * B * T * C * C             # attention projection
                  + 16 * B * T * C * C)           # MLP fc + proj
    kv_bytes = 2 * B * T * C * 2 * max(1, (nq + 1) // 2)   # causal-clamped K/V re-reads
    out = pl.pallas_call(
        functools.partial(attn_mlp_kernel, n_head=H, head_dim=hd, tq=tq, tk=tk),
        out_shape=jax.ShapeDtypeStruct((B, T, C), x.dtype),
        grid_spec=pltpu.PrefetchScalarGridSpec(
            num_scalar_prefetch=0,
            grid=(B, nq, nkv),
            in_specs=in_specs,
            out_specs=pl.BlockSpec((1, tq, C), lambda b, i, j: (b, i, 0)),
            scratch_shapes=[
                pltpu.VMEM((H, tq, 1), f32),    # running max  m (per head)
                pltpu.VMEM((H, tq, 1), f32),    # running sum  l (per head)
                pltpu.VMEM((tq, C), f32),       # running acc, packed (tq, C) layout
            ],
        ),
        compiler_params=pltpu.CompilerParams(
            dimension_semantics=("parallel", "parallel", "arbitrary"),
            vmem_limit_bytes=vmem_limit),
        cost_estimate=pl.CostEstimate(
            flops=attn_flops,
            transcendentals=B * H * T * T + B * T * 4 * C,
            bytes_accessed=(2 * B * T * C * 4 + B * T * C * 2 + kv_bytes
                            + (w_apr.size + w_fc.size + w_mpr.size) * 2)),
    )(q, k, v, x, *attn_weights)
    return out


# ---------------- pure-JAX f32 reference for verification ----------------
def gpt2_block_ref(x, params, n_head):
    B, T, C = x.shape
    hd = C // n_head

    h = _layernorm(x, params['ln1_g'][0], params['ln1_b'][0])
    qkv = jnp.einsum('btc,cd->btd', h, params['w_qkv']) + params['b_qkv'][0]
    q, k, v = jnp.split(qkv, 3, axis=-1)
    q = q.reshape(B, T, n_head, hd).transpose(0, 2, 1, 3)
    k = k.reshape(B, T, n_head, hd).transpose(0, 2, 1, 3)
    v = v.reshape(B, T, n_head, hd).transpose(0, 2, 1, 3)
    scores = jnp.einsum('bhtd,bhsd->bhts', q, k) / math.sqrt(hd)
    mask = jnp.tril(jnp.ones((T, T), bool))
    scores = jnp.where(mask[None, None], scores, -1e30)
    p = jax.nn.softmax(scores, axis=-1)
    y = jnp.einsum('bhts,bhsd->bhtd', p, v).transpose(0, 2, 1, 3).reshape(B, T, C)
    attn_out = jnp.einsum('btc,cd->btd', y, params['w_apr']) + params['b_apr'][0]
    x1 = x + attn_out

    h2 = _layernorm(x1, params['ln2_g'][0], params['ln2_b'][0])
    f = jnp.einsum('btc,cd->btd', h2, params['w_fc']) + params['b_fc'][0]
    g = _gelu_tanh(f)
    mlp_out = jnp.einsum('btd,dc->btc', g, params['w_mpr']) + params['b_mpr'][0]
    return x1 + mlp_out


if __name__ == "__main__":
    # small GPT-ish setup: batch=2, seq=128, n_embd=64, n_head=4
    B, T, C, n_head = 2, 128, 64, 4

    key = jax.random.PRNGKey(0)
    ks = jax.random.split(key, 12)
    std = 0.02

    params = {
        'ln1_g': (1.0 + 0.1 * jax.random.normal(ks[5], (1, C))).astype(jnp.float32),
        'ln1_b': (0.1 * jax.random.normal(ks[6], (1, C))).astype(jnp.float32),
        # Linear weights stored as (in, out)  ==  PyTorch weight.T
        'w_qkv': (std * jax.random.normal(ks[0], (C, 3 * C))).astype(jnp.float32),
        'b_qkv': (std * jax.random.normal(ks[7], (1, 3 * C))).astype(jnp.float32),
        'w_apr': (std * jax.random.normal(ks[1], (C, C))).astype(jnp.float32),
        'b_apr': (std * jax.random.normal(ks[8], (1, C))).astype(jnp.float32),
        'ln2_g': (1.0 + 0.1 * jax.random.normal(ks[9], (1, C))).astype(jnp.float32),
        'ln2_b': (0.1 * jax.random.normal(ks[10], (1, C))).astype(jnp.float32),
        'w_fc': (std * jax.random.normal(ks[2], (C, 4 * C))).astype(jnp.float32),
        'b_fc': (std * jax.random.normal(ks[11], (1, 4 * C))).astype(jnp.float32),
        'w_mpr': (std * jax.random.normal(ks[3], (4 * C, C))).astype(jnp.float32),
        'b_mpr': jnp.zeros((1, C), jnp.float32),
    }

    x = jax.random.normal(ks[4], (B, T, C), jnp.float32)

    ref = gpt2_block_ref(x, params, n_head)

    # 1) default tiling (single kv tile at this small T)
    out = gpt2_block_pallas(x, params, n_head)
    out = jax.block_until_ready(out)
    assert out.shape == (B, T, C)
    max_err = float(jnp.max(jnp.abs(out - ref)))
    # bf16 MXU operands + approx reciprocal -> compare against f32 reference with a
    # tolerance comfortably above the expected ~1e-3 rounding error.
    assert max_err < 2e-2, f"max err (default tiles) = {max_err}"

    # 2) explicit small tiles to exercise the multi-tile flash path, the causal
    #    tile-skip (pl.when) and the clamped (no-DMA) KV index map.
    out_tiled = gpt2_block_pallas(x, params, n_head, tq=64, tk=64)
    out_tiled = jax.block_until_ready(out_tiled)
    max_err_t = float(jnp.max(jnp.abs(out_tiled - ref)))
    assert max_err_t < 2e-2, f"max err (tq=tk=64) = {max_err_t}"

    print("KERNEL_OK")
</pallas_src>

<mosaic_0001>
module attributes {stable_mosaic.version = 11 : i64} {
  func.func @qkv_kernel(%arg0: i32, %arg1: i32, %arg2: memref<1x128x64xf32, #tpu.memory_space<vmem>>, %arg3: memref<1x64xf32, #tpu.memory_space<vmem>>, %arg4: memref<1x64xf32, #tpu.memory_space<vmem>>, %arg5: memref<64x192xbf16, #tpu.memory_space<vmem>>, %arg6: memref<1x192xf32, #tpu.memory_space<vmem>>, %arg7: memref<1x128x64xbf16, #tpu.memory_space<vmem>>, %arg8: memref<1x128x64xbf16, #tpu.memory_space<vmem>>, %arg9: memref<1x128x64xbf16, #tpu.memory_space<vmem>>) attributes {dimension_semantics = [#tpu.dimension_semantics<parallel>, #tpu.dimension_semantics<parallel>], iteration_bounds = array<i64: 2, 1>, scalar_prefetch = 0 : i64, scratch_operands = 0 : i64, tpu.core_type = #tpu.core_type<tc>, window_params = [{transform_indices = @transform_0, window_bounds = array<i64: 1, 128, 64>}, {pipeline_mode = #tpu.pipeline_mode<synchronous>, transform_indices = @transform_1, window_bounds = array<i64: 1, 64>}, {pipeline_mode = #tpu.pipeline_mode<synchronous>, transform_indices = @transform_2, window_bounds = array<i64: 1, 64>}, {pipeline_mode = #tpu.pipeline_mode<synchronous>, transform_indices = @transform_3, window_bounds = array<i64: 64, 192>}, {pipeline_mode = #tpu.pipeline_mode<synchronous>, transform_indices = @transform_4, window_bounds = array<i64: 1, 192>}, {transform_indices = @transform_5, window_bounds = array<i64: 1, 128, 64>}, {transform_indices = @transform_6, window_bounds = array<i64: 1, 128, 64>}, {transform_indices = @transform_7, window_bounds = array<i64: 1, 128, 64>}]} {
    %c0 = arith.constant 0 : index
    %c0_0 = arith.constant 0 : index
    %c0_1 = arith.constant 0 : index
    %0 = vector.load %arg2[%c0, %c0_0, %c0_1] : memref<1x128x64xf32, #tpu.memory_space<vmem>>, vector<1x128x64xf32>
    %1 = vector.shape_cast %0 : vector<1x128x64xf32> to vector<128x64xf32>
    %c0_2 = arith.constant 0 : index
    %c0_3 = arith.constant 0 : index
    %2 = vector.load %arg3[%c0_2, %c0_3] : memref<1x64xf32, #tpu.memory_space<vmem>>, vector<1x64xf32>
    %3 = vector.shape_cast %2 : vector<1x64xf32> to vector<64xf32>
    %c0_4 = arith.constant 0 : index
    %c0_5 = arith.constant 0 : index
    %4 = vector.load %arg4[%c0_4, %c0_5] : memref<1x64xf32, #tpu.memory_space<vmem>>, vector<1x64xf32>
    %5 = vector.shape_cast %4 : vector<1x64xf32> to vector<64xf32>
    %cst = arith.constant dense<0.000000e+00> : vector<128xf32>
    %6 = vector.multi_reduction <add>, %1, %cst [1] : vector<128x64xf32> to vector<128xf32>
    %7 = vector.shape_cast %6 : vector<128xf32> to vector<128x1xf32>
    %cst_6 = arith.constant 6.400000e+01 : f32
    %8 = vector.broadcast %cst_6 : f32 to vector<128x1xf32>
    %9 = arith.divf %7, %8 : vector<128x1xf32>
    %10 = vector.broadcast %9 : vector<128x1xf32> to vector<128x64xf32>
    %11 = arith.subf %1, %10 : vector<128x64xf32>
    %12 = arith.mulf %11, %11 : vector<128x64xf32>
    %cst_7 = arith.constant dense<0.000000e+00> : vector<128xf32>
    %13 = vector.multi_reduction <add>, %12, %cst_7 [1] : vector<128x64xf32> to vector<128xf32>
    %14 = vector.shape_cast %13 : vector<128xf32> to vector<128x1xf32>
    %cst_8 = arith.constant 6.400000e+01 : f32
    %15 = vector.broadcast %cst_8 : f32 to vector<128x1xf32>
    %16 = arith.divf %14, %15 : vector<128x1xf32>
    %17 = vector.broadcast %9 : vector<128x1xf32> to vector<128x64xf32>
    %18 = arith.subf %1, %17 : vector<128x64xf32>
    %cst_9 = arith.constant 9.99999974E-6 : f32
    %19 = vector.broadcast %cst_9 : f32 to vector<128x1xf32>
    %20 = arith.addf %16, %19 : vector<128x1xf32>
    %21 = math.rsqrt %20 : vector<128x1xf32>
    %22 = vector.broadcast %21 : vector<128x1xf32> to vector<128x64xf32>
    %23 = arith.mulf %18, %22 : vector<128x64xf32>
    %24 = vector.shape_cast %3 : vector<64xf32> to vector<1x64xf32>
    %25 = vector.broadcast %24 : vector<1x64xf32> to vector<128x64xf32>
    %26 = arith.mulf %23, %25 : vector<128x64xf32>
    %27 = vector.shape_cast %5 : vector<64xf32> to vector<1x64xf32>
    %28 = vector.broadcast %27 : vector<1x64xf32> to vector<128x64xf32>
    %29 = arith.addf %26, %28 : vector<128x64xf32>
    %30 = arith.truncf %29 : vector<128x64xf32> to vector<128x64xbf16>
    %c0_10 = arith.constant 0 : index
    %c0_11 = arith.constant 0 : index
    %31 = vector.load %arg5[%c0_10, %c0_11] : memref<64x192xbf16, #tpu.memory_space<vmem>>, vector<64x192xbf16>
    %cst_12 = arith.constant dense<0.000000e+00> : vector<128x192xf32>
    %32 = tpu.matmul %30, %31, %cst_12 {dimension_numbers = #tpu.dot_dimension_numbers<[1], [0], [0], [1], [0, 0, 1, 1], [], []>} : vector<128x64xbf16>, vector<64x192xbf16>, vector<128x192xf32> -> vector<128x192xf32>
    %c0_13 = arith.constant 0 : index
    %c0_14 = arith.constant 0 : index
    %33 = vector.load %arg6[%c0_13, %c0_14] : memref<1x192xf32, #tpu.memory_space<vmem>>, vector<1x192xf32>
    %34 = vector.shape_cast %33 : vector<1x192xf32> to vector<192xf32>
    %35 = vector.shape_cast %34 : vector<192xf32> to vector<1x192xf32>
    %36 = vector.broadcast %35 : vector<1x192xf32> to vector<128x192xf32>
    %37 = arith.addf %32, %36 : vector<128x192xf32>
    %38 = vector.extract_strided_slice %37 {offsets = [0, 0], sizes = [128, 64], strides = [1, 1]} : vector<128x192xf32> to vector<128x64xf32>
    %39 = arith.truncf %38 : vector<128x64xf32> to vector<128x64xbf16>
    %c0_15 = arith.constant 0 : index
    %c0_16 = arith.constant 0 : index
    %c0_17 = arith.constant 0 : index
    %40 = vector.load %arg7[%c0_15, %c0_16, %c0_17] : memref<1x128x64xbf16, #tpu.memory_space<vmem>>, vector<1x128x64xbf16>
    %41 = vector.shape_cast %40 : vector<1x128x64xbf16> to vector<128x64xbf16>
    %42 = vector.shape_cast %39 : vector<128x64xbf16> to vector<1x128x64xbf16>
    tpu.vector_store %arg7[%c0_15, %c0_16, %c0_17], %42 {strides = array<i32>} : memref<1x128x64xbf16, #tpu.memory_space<vmem>>, vector<1x128x64xbf16>,
    %43 = vector.extract_strided_slice %37 {offsets = [0, 64], sizes = [128, 64], strides = [1, 1]} : vector<128x192xf32> to vector<128x64xf32>
    %44 = arith.truncf %43 : vector<128x64xf32> to vector<128x64xbf16>
    %c0_18 = arith.constant 0 : index
    %c0_19 = arith.constant 0 : index
    %c0_20 = arith.constant 0 : index
    %45 = vector.load %arg8[%c0_18, %c0_19, %c0_20] : memref<1x128x64xbf16, #tpu.memory_space<vmem>>, vector<1x128x64xbf16>
    %46 = vector.shape_cast %45 : vector<1x128x64xbf16> to vector<128x64xbf16>
    %47 = vector.shape_cast %44 : vector<128x64xbf16> to vector<1x128x64xbf16>
    tpu.vector_store %arg8[%c0_18, %c0_19, %c0_20], %47 {strides = array<i32>} : memref<1x128x64xbf16, #tpu.memory_space<vmem>>, vector<1x128x64xbf16>,
    %48 = vector.extract_strided_slice %37 {offsets = [0, 128], sizes = [128, 64], strides = [1, 1]} : vector<128x192xf32> to vector<128x64xf32>
    %49 = arith.truncf %48 : vector<128x64xf32> to vector<128x64xbf16>
    %c0_21 = arith.constant 0 : index
    %c0_22 = arith.constant 0 : index
    %c0_23 = arith.constant 0 : index
    %50 = vector.load %arg9[%c0_21, %c0_22, %c0_23] : memref<1x128x64xbf16, #tpu.memory_space<vmem>>, vector<1x128x64xbf16>
    %51 = vector.shape_cast %50 : vector<1x128x64xbf16> to vector<128x64xbf16>
    %52 = vector.shape_cast %49 : vector<128x64xbf16> to vector<1x128x64xbf16>
    tpu.vector_store %arg9[%c0_21, %c0_22, %c0_23], %52 {strides = array<i32>} : memref<1x128x64xbf16, #tpu.memory_space<vmem>>, vector<1x128x64xbf16>,
    return
  }
  func.func @transform_0(%arg0: i32, %arg1: i32) -> (i32, i32, i32) {
    %c0_i32 = arith.constant 0 : i32
    %c0_i32_0 = arith.constant 0 : i32
    return %arg0, %arg1, %c0_i32 : i32, i32, i32
  }
  func.func @transform_1(%arg0: i32, %arg1: i32) -> (i32, i32) {
    %c0_i32 = arith.constant 0 : i32
    %c0_i32_0 = arith.constant 0 : i32
    %c0_i32_1 = arith.constant 0 : i32
    return %c0_i32, %c0_i32_0 : i32, i32
  }
  func.func @transform_2(%arg0: i32, %arg1: i32) -> (i32, i32) {
    %c0_i32 = arith.constant 0 : i32
    %c0_i32_0 = arith.constant 0 : i32
    %c0_i32_1 = arith.constant 0 : i32
    return %c0_i32, %c0_i32_0 : i32, i32
  }
  func.func @transform_3(%arg0: i32, %arg1: i32) -> (i32, i32) {
    %c0_i32 = arith.constant 0 : i32
    %c0_i32_0 = arith.constant 0 : i32
    %c0_i32_1 = arith.constant 0 : i32
    return %c0_i32, %c0_i32_0 : i32, i32
  }
  func.func @transform_4(%arg0: i32, %arg1: i32) -> (i32, i32) {
    %c0_i32 = arith.constant 0 : i32
    %c0_i32_0 = arith.constant 0 : i32
    %c0_i32_1 = arith.constant 0 : i32
    return %c0_i32, %c0_i32_0 : i32, i32
  }
  func.func @transform_5(%arg0: i32, %arg1: i32) -> (i32, i32, i32) {
    %c0_i32 = arith.constant 0 : i32
    %c0_i32_0 = arith.constant 0 : i32
    return %arg0, %arg1, %c0_i32 : i32, i32, i32
  }
  func.func @transform_6(%arg0: i32, %arg1: i32) -> (i32, i32, i32) {
    %c0_i32 = arith.constant 0 : i32
    %c0_i32_0 = arith.constant 0 : i32
    return %arg0, %arg1, %c0_i32 : i32, i32, i32
  }
  func.func @transform_7(%arg0: i32, %arg1: i32) -> (i32, i32, i32) {
    %c0_i32 = arith.constant 0 : i32
    %c0_i32_0 = arith.constant 0 : i32
    return %arg0, %arg1, %c0_i32 : i32, i32, i32
  }
}

</mosaic_0001>

<bundles_post_ra>
// kernel: tpu_custom_call.1
= control target key start
LH: loop header
LB: loop body
LE: loop exit
PB: predicated region body
PF: predicated region fallthrough
CT: control target
= control target key end

     0   :  { %s2741_s0 = inlined_call_operand.hbm [shape: f32[2,128,64], index: 0, kind: input, shape index: {}]   ;;  %s2742_s1 = inlined_call_operand.hbm [shape: f32[1,64], index: 1, kind: input, shape index: {}]   ;;  %s2743_s2 = inlined_call_operand.hbm [shape: f32[1,64], index: 2, kind: input, shape index: {}]   ;;  %s2744_s3 = inlined_call_operand.hbm [shape: bf16[64,192], index: 3, kind: input, shape index: {}]   ;;  %s2745_s4 = inlined_call_operand.hbm [shape: f32[1,192], index: 4, kind: input, shape index: {}]   ;;  %s2746_s5 = inlined_call_operand.hbm [shape: bf16[2,128,64], index: 5, kind: output, shape index: {0}]   ;;  %s2747_s6 = inlined_call_operand.hbm [shape: bf16[2,128,64], index: 6, kind: output, shape index: {1}]   ;;  %s2748_s7 = inlined_call_operand.hbm [shape: bf16[2,128,64], index: 7, kind: output, shape index: {2}]  }
   0x1   :  { %2755 = sst [smem:[#allocation21_spill]] %s2742_s1 }
   0x2   :  { %13 = vsyncpa [#allocation3], 0 }
   0x3   :  { %15 = vsyncpa [#allocation3 + $0x1], 0 }
   0x4   :  { %16 = vsyncpa [#allocation6], 0 }
   0x5   :  { %17 = vsyncpa [#allocation9], 0 }
   0x6   :  { %18 = vsyncpa [#allocation4], 0 }
   0x7   :  { %20 = vsyncpa [#allocation4 + $0x1], 0 }
   0x8   :  { %21 = vsyncpa [#allocation13], 0 }
   0x9   :  { %23 = vsyncpa [#allocation13 + $0x1], 0  ;;  %s1984_s24 = smov 0   ;;  %s1986_s25 = smov 0  }
   0xa   :  { %s1988_s26 = smov 0   ;;  %s1990_s27 = smov 0  }
   0xb   :  { %s1992_s28 = smov 0   ;;  %s1994_s29 = smov 0  }
   0xc LB: > { %s2015_s30 = sadd.s32 4294967295, %s1929_s29   ;;  %s2752_s8 = sadd.s32 4294967294, %s1929_s29   ;;  %s1929_s29 = sphi %s1994_s29, %s29_s29   ;;  %s1925_s28 = sphi %s1992_s28, %s2782_s28   ;;  %s1921_s27 = sphi %s1990_s27, %s2781_s27   ;;  %s1917_s26 = sphi %s1988_s26, %s2780_s26   ;;  %s1913_s25 = sphi %s1986_s25, %s2779_s25   ;;  %s1909_s24 = sphi %s1984_s24, %s2778_s24  }
   0xd   : > { %p63_p0 = scmp.ne.s32.totalorder %s1913_s25, %s1909_s24  ;;  %p2749_p1 = scmp.eq.s32.totalorder %s2015_s30, 0 }
   0xe   : > { %p179_p3 = scmp.eq.s32.totalorder %s2752_s8, 1  ;;  %p1352_p5 = scmp.ge.s32.totalorder %s1929_s29, 1 }
   0xf   : > { %p2026_p4 = por %p2749_p1, %p63_p0  ;;  %p242_p7 = scmp.lt.s32.totalorder %s1929_s29, 3 }
  0x10   : > { %p2031_p6 = por %p179_p3, %p63_p0  ;;  %s1931_s12 = smov [#allocation5]  }
  0x11   : > { %s2756_s9 = scalar_select %p2026_p4, 1, 0 }
  0x12   : > { %s2757_s10 = scalar_select %p2031_p6, 1, 0 }
  0x13   : > { %p2036_p8 = pnand %p1352_p5, %p242_p7  ;;  %s255_s13 = sshll.u32 %s1931_s12, 4  ;;  %s256_s13 = int_to_ptr.vmem [resolvable:$true] %s255_s13 }
  0x14   : > { %2758 = sst [smem:[#allocation20_spill]] %s2757_s10  ;;  %s1932_s14 = smov [#allocation8]  }
  0x15   : > { %s2759_s11 = scalar_select %p2036_p8, 1, 0 }
  0x16   : > { %p1499_p10 = pneg %p2036_p8  ;;  %s276_s15 = sshll.u32 %s1932_s14, 4  ;;  %s2049_s15 = int_to_ptr.vmem [resolvable:$true] %s276_s15 }
  0x17   : > { %s1933_s17 = smov [#allocation7]   ;;  %s2761_s1 = sld [smem:[#allocation21_spill]] }
  0x18   : > { %p2045_p11 = pnand %p1499_p10, %p2749_p1  ;;  %s2051_s18 = sshll.u32 %s1933_s17, 4  ;;  %s267_s18 = int_to_ptr.vmem [resolvable:$true] %s2051_s18 }
  0x1a   : > { %p2061_p13 = pneg %p2045_p11 }
  0x1d   : > { %s1637_s21 = scalar_lea.hbm %s2761_s1, 16 }
  0x1e   : > { %p1638_p12 = scmp.ne.s32.totalorder %s2761_s1, %s1637_s21  ;;  %p1644_p5 = scmp.lt.u32.totalorder %s1637_s21, %s2761_s1 }
  0x20   : > { %p1640_p0 = pnand %p2061_p13, %p1638_p12 }
  0x22   : > { %p1641_p3 = pneg %p1640_p0 }
  0x24   : > { %p1646_p7 = pnand %p1644_p5, %p1641_p3 }
  0x26   : > { %1649 = shalt.err (!%p1646_p7)
}
  0x27   : > { %s1650_s19 = scalar_lea.vmem %s256_s13, 16  ;;  %s1657_s20 = scalar_lea.vmem %s256_s13, 32 }
  0x28   : > { %p1651_p10 = scmp.ne.s32.totalorder %s256_s13, %s1650_s19  ;;  %p1658_p2 = scmp.lt.s32.totalorder %s256_s13, %s256_s13 }
  0x29   : > { %p1659_p6 = scmp.lt.s32.totalorder %s1657_s20, %s1650_s19 }
  0x2a   : > { %p1653_p9 = pnand %p1651_p10, %p2061_p13 }
  0x2b   : > { %p1660_p4 = por %p1659_p6, %p1658_p2 }
  0x2c   : > { %p1654_p1 = pneg %p1653_p9 }
  0x2e   : > { %p1661_p8 = pnand %p1660_p4, %p1654_p1 }
  0x30   : > { %1664 = shalt.err (!%p1661_p8)
}
  0x31   : > { %1502 = dma.hbm_to_vmem [thread:$0]  (!%p2045_p11), %s2761_s1, 16, %s256_s13, [#allocation6]  }
  0x32   : > { %s1665_s17 = scalar_lea.hbm %s2744_s3, 1024 }
  0x33   : > { %p1666_p9 = scmp.ne.s32.totalorder %s2744_s3, %s1665_s17  ;;  %p1672_p1 = scmp.lt.u32.totalorder %s1665_s17, %s2744_s3 }
  0x35   : > { %p1668_p12 = pnand %p1666_p9, %p2061_p13 }
  0x37   : > { %p1669_p2 = pneg %p1668_p12 }
  0x39   : > { %p1674_p4 = pnand %p1672_p1, %p1669_p2 }
  0x3b   : > { %1677 = shalt.err (!%p1674_p4)
}
  0x3c   : > { %s1678_s13 = scalar_lea.vmem %s2049_s15, 1024  ;;  %p1686_p3 = scmp.lt.s32.totalorder %s2049_s15, %s2049_s15 }
  0x3d   : > { %p1679_p6 = scmp.ne.s32.totalorder %s2049_s15, %s1678_s13  ;;  %p1687_p5 = scmp.lt.s32.totalorder %s1678_s13, %s1678_s13 }
  0x3f   : > { %p1681_p8 = pnand %p1679_p6, %p2061_p13  ;;  %p1688_p7 = por %p1687_p5, %p1686_p3 }
  0x41   : > { %p1682_p0 = pneg %p1681_p8 }
  0x43   : > { %p1689_p10 = pnand %p1688_p7, %p1682_p0 }
  0x45   : > { %1692 = shalt.err (!%p1689_p10)
}
  0x46   : > { %s2754_s8 = smov 128   ;;  %s1935_s10 = smov 8  }
  0x47   : > { %1508 = dma.hbm_to_vmem [thread:$0]  (!%p2045_p11), %s2744_s3, 1024, %s2049_s15, [#allocation9], %s2754_s8, %s2754_s8, %s1935_s10  }
  0x48   : > { %s1693_s17 = scalar_lea.hbm %s2743_s2, 16 }
  0x49   : > { %p1694_p9 = scmp.ne.s32.totalorder %s2743_s2, %s1693_s17  ;;  %p1700_p1 = scmp.lt.u32.totalorder %s1693_s17, %s2743_s2 }
  0x4b   : > { %p1696_p12 = pnand %p1694_p9, %p2061_p13 }
  0x4d   : > { %p1697_p2 = pneg %p1696_p12 }
  0x4f   : > { %p1702_p4 = pnand %p1700_p1, %p1697_p2 }
  0x51   : > { %1705 = shalt.err (!%p1702_p4)
}
  0x52   : > { %s1706_s22 = scalar_lea.vmem %s267_s18, 16  ;;  %s1713_s15 = scalar_lea.vmem %s267_s18, 32 }
  0x53   : > { %p1707_p6 = scmp.ne.s32.totalorder %s267_s18, %s1706_s22  ;;  %p1714_p3 = scmp.lt.s32.totalorder %s267_s18, %s267_s18 }
  0x54   : > { %p1715_p5 = scmp.lt.s32.totalorder %s1713_s15, %s1706_s22 }
  0x55   : > { %p1709_p8 = pnand %p1707_p6, %p2061_p13 }
  0x56   : > { %p1716_p7 = por %p1715_p5, %p1714_p3 }
  0x57   : > { %p1710_p0 = pneg %p1709_p8 }
  0x59   : > { %p1717_p10 = pnand %p1716_p7, %p1710_p0 }
  0x5b   : > { %1720 = shalt.err (!%p1717_p10)
}
  0x5c   : > { %1505 = dma.hbm_to_vmem [thread:$0]  (!%p2045_p11), %s2743_s2, 16, %s267_s18, [#allocation6]  }
  0x5d   : > { %s1936_s1 = smov [#allocation10]   ;;  %s1721_s20 = scalar_lea.hbm %s2745_s4, 32 }
  0x5e   : > { %s290_s14 = sshll.u32 %s1936_s1, 4  ;;  %p1722_p9 = scmp.ne.s32.totalorder %s2745_s4, %s1721_s20  ;;  %s291_s14 = int_to_ptr.vmem [resolvable:$true] %s290_s14 }
  0x5f   : > { %p1728_p1 = scmp.lt.u32.totalorder %s1721_s20, %s2745_s4 }
  0x60   : > { %p1724_p12 = pnand %p1722_p9, %p2061_p13 }
  0x62   : > { %p1725_p2 = pneg %p1724_p12 }
  0x64   : > { %p1730_p4 = pnand %p1728_p1, %p1725_p2 }
  0x66   : > { %1733 = shalt.err (!%p1730_p4)
}
  0x67   : > { %s1734_s18 = scalar_lea.vmem %s291_s14, 32  ;;  %p1742_p3 = scmp.lt.s32.totalorder %s291_s14, %s291_s14 }
  0x68   : > { %p1735_p6 = scmp.ne.s32.totalorder %s291_s14, %s1734_s18  ;;  %p1743_p5 = scmp.lt.s32.totalorder %s1734_s18, %s1734_s18 }
  0x6a   : > { %p1737_p8 = pnand %p1735_p6, %p2061_p13  ;;  %p1744_p7 = por %p1743_p5, %p1742_p3 }
  0x6c   : > { %p1738_p0 = pneg %p1737_p8 }
  0x6e   : > { %p1745_p10 = pnand %p1744_p7, %p1738_p0 }
  0x70   : > { %1748 = shalt.err (!%p1745_p10)
}
  0x71   : > { %1511 = dma.hbm_to_vmem [thread:$0]  (!%p2045_p11), %s2745_s4, 32, %s291_s14, [#allocation9]  }
  0x72   : > { %s41_s12 = sadd.s32 1, %s1925_s28  ;;  %s50_s21 = sadd.s32 1, %s1917_s26 }
  0x73   : > { %p43_p13 = scmp.ge.s32.totalorder %s41_s12, 2  ;;  %p57_p9 = scmp.ne.s32.totalorder %s1917_s26, %s1913_s25 }
  0x74   : > { %p58_p12 = scmp.eq.s32.totalorder %s1929_s29, 0  ;;  %p1530_p2 = scmp.lt.s32.totalorder %s1929_s29, 2 }
  0x75   : > { %s2784_s12 = smov (%p43_p13, %s41_s12), 0  ;;  %p2763_p4 = scmp.eq.s32.totalorder %s2015_s30, 1 }
  0x76   : > { %p59_p1 = por %p58_p12, %p57_p9  ;;  %s45_s1 = ssub.s32 %s1925_s28, %s2784_s12 }
  0x77   : > { %p2150_p6 = por %p2763_p4, %p57_p9  ;;  %s301_s17 = sand.u32 1, %s1917_s26  }
  0x78   : > { %p48_p8 = scmp.eq.s32.totalorder %s45_s1, 0  ;;  %s1358_s14 = sshll.u32 %s301_s17, 7 }
  0x79   : > { %s1431_s19 = sshll.u32 %s1925_s28, 11  ;;  %s305_s18 = scalar_lea.vmem [#allocation2], %s1358_s14 }
  0x7a   : > { %s2159_s20 = scalar_select %p48_p8, %s1917_s26, %s50_s21  }
  0x7b   : > { %s2164_s15 = scalar_lea.hbm %s2741_s0, %s1431_s19  ;;  %s314_s8 = sshll.u32 %s305_s18, 4  ;;  %s2172_s8 = int_to_ptr.vmem [resolvable:$true] %s314_s8 }
  0x7c   : > { %p2168_p11 = pnand %p1530_p2, %p59_p1  ;;  %s2174_s21 = scalar_lea.sflag [#allocation3], %s301_s17 }
  0x7d   : > { %s1749_s1 = scalar_lea.hbm %s2164_s15, 2048  ;;  %s1754_s13 = scalar_lea.hbm %s2741_s0, 4096 }
  0x7e   : > { %p1750_p0 = scmp.ne.s32.totalorder %s2164_s15, %s1749_s1  ;;  %p1751_p3 = pneg %p2168_p11 }
  0x7f   : > { %p1755_p10 = scmp.lt.u32.totalorder %s2164_s15, %s2741_s0  ;;  %p1756_p13 = scmp.lt.u32.totalorder %s1754_s13, %s1749_s1 }
  0x80   : > { %p1752_p5 = pnand %p1751_p3, %p1750_p0  ;;  %p1758_p12 = scmp.lt.u32.totalorder %s1749_s1, %s2164_s15 }
  0x81   : > { %p1757_p9 = por %p1756_p13, %p1755_p10 }
  0x82   : > { %p1753_p7 = pneg %p1752_p5 }
  0x83   : > { %p1759_p2 = por %p1758_p12, %p1757_p9 }
  0x85   : > { %p1760_p1 = pnand %p1759_p2, %p1753_p7 }
  0x87   : > { %1763 = shalt.err (!%p1760_p1)
}
  0x88   : > { %s1764_s17 = scalar_lea.vmem %s2172_s8, 2048  ;;  %s1937_s14 = smov [#allocation2]  }
  0x89   : > { %p1765_p4 = scmp.ne.s32.totalorder %s2172_s8, %s1764_s17  ;;  %s1769_s19 = sshll.u32 %s1937_s14, 4  ;;  %s1770_s19 = int_to_ptr.vmem [resolvable:$false] %s1769_s19 }
  0x8a   : > { %s1771_s22 = scalar_lea.vmem %s1770_s19, 4096  ;;  %p1772_p5 = scmp.lt.s32.totalorder %s2172_s8, %s1770_s19 }
  0x8b   : > { %p1767_p8 = pnand %p1765_p4, %p1751_p3  ;;  %p1773_p10 = scmp.lt.s32.totalorder %s1771_s22, %s1764_s17 }
  0x8d   : > { %p1768_p0 = pneg %p1767_p8  ;;  %p1774_p13 = por %p1773_p10, %p1772_p5 }
  0x8f   : > { %p1775_p9 = pnand %p1774_p13, %p1768_p0 }
  0x91   : > { %1778 = shalt.err (!%p1775_p9)
}
  0x92   : > { %s2766_s1 = smov 128   ;;  %p2767_p3 = scmp.ne.s32.totalorder %s2759_s11, 0 }
  0x93   : > { %1515 = dma.hbm_to_vmem [thread:$0]  (!%p2168_p11), %s2164_s15, 2048, %s2172_s8, %s2174_s21, %s2766_s1, %s2766_s1, %s1935_s10  }
  0x94   : > { %326 = sbr.rel (%p2767_p3) target bundleno = 893 (0x37d), region = 40  ;;  %s2208_s13 = sand.u32 (!%p2767_p3), 1, %s1913_s25  }
  0x95   : > { %s1362_s18 = sshll.u32 (!%p2767_p3), %s2208_s13, 7  ;;  %s329_s17 = scalar_lea.sflag (!%p2767_p3), [#allocation3], %s2208_s13 }
  0x96   : > { %s2212_s14 = scalar_lea.vmem (!%p2767_p3), [#allocation2], %s1362_s18  ;;  %p2768_p7 = scmp.ne.s32.totalorder (!%p2767_p3), %s2756_s9, 0 }
  0x9b   : > { %1888 = dma.done.wait (%p2768_p7), %s329_s17, 2048  }
  0x9c   : > { %1890 = vsyncadd (%p2768_p7), %s329_s17, 4294965248  ;;  %p2769_p11 = scmp.eq.s32.totalorder %s2015_s30, 0 }
  0x9e   : > { %1892 = dma.done.wait (%p2769_p11), [#allocation6], 32   ;;  %p2770_p12 = pmov %p2769_p11 }
  0x9f   : > { %p2771_p2 = pmov %p2769_p11 }
  0xa0   : > { %1894 = vsyncadd (%p2770_p12), [#allocation6], 4294967264 }
  0xa1   : > { %1896 = dma.done.wait (%p2771_p2), [#allocation9], 1056   ;;  %p2772_p1 = pmov %p2771_p2 }
  0xa2   : > { %vm412_vm0 = vcmask 523264   ;;  %v394_v0 = vld [vmem:[%s2212_s14] sm:$0xff]  ;;  %v395_v2 = vld [vmem:[%s2212_s14 + $0x8] sm:$0xff]  ;;  %v396_v8 = vld [vmem:[%s2212_s14 + $0x10] sm:$0xff]  ;;  %s2451_s9 = sshll.u32 %s2208_s13, 6  ;;  %vm935_vm1 = vcmask 519168  }
  0xa3   : > { %1898 = vsyncadd (%p2772_p1), [#allocation9], 4294966240  ;;  %v402_v1 = vld [vmem:[%s2212_s14 + $0x40] sm:$0xff]  ;;  %v413_v3 = vsel %vm412_vm0, %v394_v0, 0.0  ;;  %v403_v5 = vld [vmem:[%s2212_s14 + $0x48] sm:$0xff]  ;;  %v416_v6 = vsel %vm412_vm0, %v395_v2, 0.0 }
  0xa4   : > { %v437_v4 = vsel %vm412_vm0, %v402_v1, 0.0  ;;  %414 = vadd.xlane.f32.xlu0 %v413_v3  ;;  %v440_v7 = vsel %vm412_vm0, %v403_v5, 0.0  ;;  %v397_v9 = vld [vmem:[%s2212_s14 + $0x18] sm:$0xff]  ;;  %v419_v10 = vsel %vm412_vm0, %v396_v8, 0.0  ;;  %v2239_v12 = vld [vmem:[%s2212_s14 + $0x50] sm:$0xff]  ;;  %v2249_v16 = vld [vmem:[%s2212_s14 + $0x20] sm:$0xff] }
  0xa5   : > { %438 = vadd.xlane.f32.xlu1 %v437_v4  ;;  %v422_v11 = vsel %vm412_vm0, %v397_v9, 0.0  ;;  %v2242_v13 = vld [vmem:[%s2212_s14 + $0x58] sm:$0xff]  ;;  %v443_v14 = vsel %vm412_vm0, %v2239_v12, 0.0  ;;  %v2252_v17 = vld [vmem:[%s2212_s14 + $0x28] sm:$0xff]  ;;  %v425_v18 = vsel %vm412_vm0, %v2249_v16, 0.0  ;;  %v2259_v20 = vld [vmem:[%s2212_s14 + $0x60] sm:$0xff] }
  0xa6   : > { %v446_v15 = vsel %vm412_vm0, %v2242_v13, 0.0  ;;  %v428_v19 = vsel %vm412_vm0, %v2252_v17, 0.0  ;;  %v2262_v21 = vld [vmem:[%s2212_s14 + $0x68] sm:$0xff]  ;;  %v449_v22 = vsel %vm412_vm0, %v2259_v20, 0.0  ;;  %v2269_v24 = vld [vmem:[%s2212_s14 + $0x30] sm:$0xff]  ;;  %v2272_v25 = vld [vmem:[%s2212_s14 + $0x38] sm:$0xff] }
  0xa7   : > { %v452_v23 = vsel %vm412_vm0, %v2262_v21, 0.0  ;;  %v431_v26 = vsel %vm412_vm0, %v2269_v24, 0.0  ;;  %v434_v27 = vsel %vm412_vm0, %v2272_v25, 0.0  ;;  %v2279_v28 = vld [vmem:[%s2212_s14 + $0x70] sm:$0xff]  ;;  %v2282_v29 = vld [vmem:[%s2212_s14 + $0x78] sm:$0xff]  ;;  %s2458_s11 = scalar_lea.vmem [#allocation11], %s2451_s9 }
  0xa8   : > { %417 = vadd.xlane.f32.xlu0 %v416_v6  ;;  %v455_v30 = vsel %vm412_vm0, %v2279_v28, 0.0  ;;  %v458_v31 = vsel %vm412_vm0, %v2282_v29, 0.0  ;;  %s1939_s10 = smov 64   ;;  %s2465_s15 = scalar_lea.vmem [#allocation14], %s2451_s9 }
  0xa9   : > { %441 = vadd.xlane.f32.xlu1 %v440_v7  ;;  %s2554_s8 = sshll.u32 %s1921_s27, 10  ;;  %s1122_s23 = sshll.u32 %s2458_s11, 4  ;;  %s2573_s23 = int_to_ptr.vmem [resolvable:$true] %s1122_s23 }
  0xaa   : > { %s2571_s19 = scalar_lea.hbm %s2746_s5, %s2554_s8  ;;  %s1779_s1 = scalar_lea.vmem %s2573_s23, 1024 }
  0xab   : > { %p1780_p4 = scmp.ne.s32.totalorder %s2573_s23, %s1779_s1  ;;  %s1940_s18 = smov [#allocation11]  }
  0xac   : > { %420 = vadd.xlane.f32.xlu0 %v419_v10  ;;  %s1783_s17 = sshll.u32 %s1940_s18, 4  ;;  %s1784_s17 = int_to_ptr.vmem [resolvable:$false] %s1783_s17 }
  0xad   : > { %423 = vadd.xlane.f32.xlu1 %v422_v11  ;;  %p1781_p8 = pnand %p1780_p4, %p2150_p6  ;;  %s1785_s14 = scalar_lea.vmem %s1784_s17, 2048 }
  0xae   : > { %p1786_p5 = scmp.lt.s32.totalorder %s2573_s23, %s1784_s17  ;;  %p1787_p10 = scmp.lt.s32.totalorder %s1785_s14, %s1779_s1 }
  0xaf   : > { %p1782_p0 = pneg %p1781_p8 }
  0xb0   : > { %444 = vadd.xlane.f32.xlu0 %v443_v14  ;;  %p1788_p13 = por %p1787_p10, %p1786_p5 }
  0xb1   : > { %447 = vadd.xlane.f32.xlu1 %v446_v15 }
  0xb2   : > { %p1789_p9 = pnand %p1788_p13, %p1782_p0 }
  0xb4   : > { %426 = vadd.xlane.f32.xlu0 %v425_v18 }
  0xb5   : > { %429 = vadd.xlane.f32.xlu1 %v428_v19 }
  0xb8   : > { %450 = vadd.xlane.f32.xlu0 %v449_v22 }
  0xb9   : > { %453 = vadd.xlane.f32.xlu1 %v452_v23 }
  0xbc   : > { %432 = vadd.xlane.f32.xlu0 %v431_v26 }
  0xbd   : > { %435 = vadd.xlane.f32.xlu1 %v434_v27 }
  0xc0   : > { %456 = vadd.xlane.f32.xlu0 %v455_v30 }
  0xc1   : > { %459 = vadd.xlane.f32.xlu1 %v458_v31 }
 0x131   : > { %v415_v32 = vpop.xlane.xlu0 %414 }
 0x132   : > { %v439_v33 = vpop.xlane.xlu1 %438  ;;  %v462_v34 = vmul.f32 0.015625, %v415_v32 }
 0x133   : > { %v470_v35 = vmul.f32 0.015625, %v439_v33 }
 0x134   : > { %v2288_v36 = vsub.f32 %v394_v0, %v462_v34 }
 0x135   : > { %v2290_v37 = vsub.f32 %v402_v1, %v470_v35  ;;  %v418_v38 = vpop.xlane.xlu0 %417 }
 0x136   : > { %v442_v39 = vpop.xlane.xlu1 %441  ;;  %v463_v40 = vmul.f32 0.015625, %v418_v38  ;;  %v494_v42 = vmul.f32 %v2288_v36, %v2288_v36 }
 0x137   : > { %v471_v41 = vmul.f32 0.015625, %v442_v39  ;;  %v502_v43 = vmul.f32 %v2290_v37, %v2290_v37 }
 0x138   : > { %v2296_v44 = vsub.f32 %v395_v2, %v463_v40  ;;  %v510_v46 = vsel %vm412_vm0, %v494_v42, 0.0 }
 0x139   : > { %v2298_v45 = vsub.f32 %v403_v5, %v471_v41  ;;  %511 = vadd.xlane.f32.xlu0 %v510_v46  ;;  %v421_v47 = vpop.xlane.xlu0 %420  ;;  %v534_v49 = vsel %vm412_vm0, %v502_v43, 0.0 }
 0x13a   : > { %v424_v48 = vpop.xlane.xlu1 %423  ;;  %v464_v50 = vmul.f32 0.015625, %v421_v47  ;;  %v495_v52 = vmul.f32 %v2296_v44, %v2296_v44 }
 0x13b   : > { %v465_v51 = vmul.f32 0.015625, %v424_v48  ;;  %v503_v53 = vmul.f32 %v2298_v45, %v2298_v45 }
 0x13c   : > { %v2306_v54 = vsub.f32 %v396_v8, %v464_v50  ;;  %v513_v56 = vsel %vm412_vm0, %v495_v52, 0.0 }
 0x13d   : > { %v2308_v55 = vsub.f32 %v397_v9, %v465_v51  ;;  %535 = vadd.xlane.f32.xlu0 %v534_v49  ;;  %514 = vadd.xlane.f32.xlu1 %v513_v56  ;;  %v445_v57 = vpop.xlane.xlu0 %444  ;;  %v537_v59 = vsel %vm412_vm0, %v503_v53, 0.0  ;;  %v1593_v49 = vld [vmem:[#allocation8 + $0x4] ss:$8 sps:$4 sm:$0xff]   ;;  %v1595_v53 = vld [vmem:[#allocation8] ss:$8 sps:$4 sm:$0xff]  }
 0x13e   : > { %v448_v58 = vpop.xlane.xlu1 %447  ;;  %v472_v60 = vmul.f32 0.015625, %v445_v57  ;;  %v496_v62 = vmul.f32 %v2306_v54, %v2306_v54  ;;  %758 = vmatprep.subr.bf16.mxu0 %v1593_v49  ;;  %1467 = vmatprep.subr.bf16.mxu1 %v1593_v49  ;;  %v1598_v57 = vld [vmem:[#allocation8 + $0x10] ss:$8 sps:$4 sm:$0xff]  }
 0x13f   : > { %v473_v61 = vmul.f32 0.015625, %v448_v58  ;;  %v497_v63 = vmul.f32 %v2308_v55, %v2308_v55  ;;  %759 = vmatpush1.bf16.msra.mxu0 %v1595_v53  ;;  %1471 = vmatpush1.bf16.msra.mxu1 %v1595_v53  ;;  %v1599_v58 = vld [vmem:[#allocation8 + $0x24] ss:$8 sps:$4 sm:$0xff]   ;;  %v2386_v53 = vld [vmem:[#allocation7] ss:$0 sm:$0xff] }
 0x140   : > { %v2317_v0 = vsub.f32 %v2239_v12, %v472_v60  ;;  %v516_v2 = vsel %vm412_vm0, %v496_v62, 0.0  ;;  %v1602_v60 = vld [vmem:[#allocation8 + $0x34] ss:$8 sps:$4 sm:$0xff]   ;;  %v1938_v62 = vmov 0  }
 0x141   : > { %v2320_v1 = vsub.f32 %v2242_v13, %v473_v61  ;;  %538 = vadd.xlane.f32.xlu1 %v537_v59  ;;  %517 = vadd.xlane.f32.xlu0 %v516_v2  ;;  %v427_v3 = vpop.xlane.xlu0 %426  ;;  %v519_v5 = vsel %vm412_vm0, %v497_v63, 0.0  ;;  %v1601_v59 = vld [vmem:[#allocation8 + $0x20] ss:$8 sps:$4 sm:$0xff]   ;;  %v1604_v61 = vld [vmem:[#allocation8 + $0x30] ss:$8 sps:$4 sm:$0xff]  }
 0x142   : > { %v430_v4 = vpop.xlane.xlu1 %429  ;;  %v466_v6 = vmul.f32 0.015625, %v427_v3  ;;  %v504_v8 = vmul.f32 %v2317_v0, %v2317_v0  ;;  %790 = vmatprep.mubr.bf16.mxu0 %v1938_v62  ;;  %830 = vmatprep.mubr.bf16.mxu1 %v1938_v62 }
 0x143   : > { %v467_v7 = vmul.f32 0.015625, %v430_v4  ;;  %v505_v9 = vmul.f32 %v2320_v1, %v2320_v1 }
 0x144   : > { %v2329_v10 = vsub.f32 %v2249_v16, %v466_v6  ;;  %v540_v12 = vsel %vm412_vm0, %v504_v8, 0.0 }
 0x145   : > { %v2332_v11 = vsub.f32 %v2252_v17, %v467_v7  ;;  %520 = vadd.xlane.f32.xlu1 %v519_v5  ;;  %541 = vadd.xlane.f32.xlu0 %v540_v12  ;;  %v451_v13 = vpop.xlane.xlu0 %450  ;;  %v543_v15 = vsel %vm412_vm0, %v505_v9, 0.0 }
 0x146   : > { %v454_v14 = vpop.xlane.xlu1 %453  ;;  %v474_v18 = vmul.f32 0.015625, %v451_v13  ;;  %v498_v22 = vmul.f32 %v2329_v10, %v2329_v10 }
 0x147   : > { %v475_v19 = vmul.f32 0.015625, %v454_v14  ;;  %v499_v16 = vmul.f32 %v2332_v11, %v2332_v11 }
 0x148   : > { %v2341_v23 = vsub.f32 %v2259_v20, %v474_v18  ;;  %v522_v26 = vsel %vm412_vm0, %v498_v22, 0.0 }
 0x149   : > { %v2344_v17 = vsub.f32 %v2262_v21, %v475_v19  ;;  %544 = vadd.xlane.f32.xlu1 %v543_v15  ;;  %523 = vadd.xlane.f32.xlu0 %v522_v26  ;;  %v433_v27 = vpop.xlane.xlu0 %432  ;;  %v525_v31 = vsel %vm412_vm0, %v499_v16, 0.0 }
 0x14a   : > { %v436_v30 = vpop.xlane.xlu1 %435  ;;  %v468_v32 = vmul.f32 0.015625, %v433_v27  ;;  %v506_v34 = vmul.f32 %v2341_v23, %v2341_v23 }
 0x14b   : > { %v469_v33 = vmul.f32 0.015625, %v436_v30  ;;  %v507_v20 = vmul.f32 %v2344_v17, %v2344_v17 }
 0x14c   : > { %v2353_v35 = vsub.f32 %v2269_v24, %v468_v32  ;;  %v546_v38 = vsel %vm412_vm0, %v506_v34, 0.0 }
 0x14d   : > { %v2356_v21 = vsub.f32 %v2272_v25, %v469_v33  ;;  %526 = vadd.xlane.f32.xlu1 %v525_v31  ;;  %547 = vadd.xlane.f32.xlu0 %v546_v38  ;;  %v457_v39 = vpop.xlane.xlu0 %456  ;;  %v549_v41 = vsel %vm412_vm0, %v507_v20, 0.0 }
 0x14e   : > { %v460_v40 = vpop.xlane.xlu1 %459  ;;  %v476_v42 = vmul.f32 0.015625, %v457_v39  ;;  %v500_v46 = vmul.f32 %v2353_v35, %v2353_v35 }
 0x14f   : > { %v477_v43 = vmul.f32 0.015625, %v460_v40  ;;  %v501_v24 = vmul.f32 %v2356_v21, %v2356_v21  ;;  %v2381_v40 = vld [vmem:[#allocation5] ss:$0 sm:$0xff] }
 0x150   : > { %v2365_v47 = vsub.f32 %v2279_v28, %v476_v42  ;;  %v528_v48 = vsel %vm412_vm0, %v500_v46, 0.0 }
 0x151   : > { %v2368_v25 = vsub.f32 %v2282_v29, %v477_v43  ;;  %550 = vadd.xlane.f32.xlu1 %v549_v41  ;;  %529 = vadd.xlane.f32.xlu0 %v528_v48  ;;  %v531_v50 = vsel %vm412_vm0, %v501_v24, 0.0  ;;  %v1596_v29 = vld [vmem:[#allocation8 + $0x14] ss:$8 sps:$4 sm:$0xff]  }
 0x152   : > { %v508_v51 = vmul.f32 %v2365_v47, %v2365_v47  ;;  %760 = vmatprep.subr.bf16.mxu0 %v1596_v29  ;;  %1468 = vmatprep.subr.bf16.mxu1 %v1596_v29 }
 0x153   : > { %v509_v52 = vmul.f32 %v2368_v25, %v2368_v25  ;;  %761 = vmatpush1.bf16.msra.mxu0 %v1598_v57  ;;  %1472 = vmatpush1.bf16.msra.mxu1 %v1598_v57 }
 0x154   : > { %v552_v28 = vsel %vm412_vm0, %v508_v51, 0.0  ;;  %762 = vmatprep.subr.bf16.mxu0 %v1599_v58  ;;  %1469 = vmatprep.subr.bf16.mxu1 %v1599_v58 }
 0x155   : > { %532 = vadd.xlane.f32.xlu1 %v531_v50  ;;  %553 = vadd.xlane.f32.xlu0 %v552_v28  ;;  %v555_v56 = vsel %vm412_vm0, %v509_v52, 0.0 }
 0x157   : > { %763 = vmatpush1.bf16.msra.mxu0 %v1601_v59  ;;  %1473 = vmatpush1.bf16.msra.mxu1 %v1601_v59 }
 0x158   : > { %764 = vmatprep.subr.bf16.mxu0 %v1602_v60  ;;  %1470 = vmatprep.subr.bf16.mxu1 %v1602_v60 }
 0x159   : > { %556 = vadd.xlane.f32.xlu1 %v555_v56 }
 0x15b   : > { %765 = vmatpush1.bf16.msra.mxu0 %v1604_v61  ;;  %1474 = vmatpush1.bf16.msra.mxu1 %v1604_v61 }
 0x1c6   : > { %v512_v63 = vpop.xlane.xlu0 %511 }
 0x1c7   : > { %v558_v2 = vmul.f32 0.015625, %v512_v63 }
 0x1c9   : > { %v574_v3 = vadd.f32 1e-05, %v558_v2 }
 0x1ca   : > { %v515_v4 = vpop.xlane.xlu1 %514  ;;  %v536_v5 = vpop.xlane.xlu0 %535 }
 0x1cb   : > { %1605 = vrsqrt.f32 %v574_v3  ;;  %v559_v6 = vmul.f32 0.015625, %v515_v4  ;;  %v566_v7 = vmul.f32 0.015625, %v536_v5 }
 0x1cd   : > { %v575_v8 = vadd.f32 1e-05, %v559_v6  ;;  %v582_v9 = vadd.f32 1e-05, %v566_v7 }
 0x1ce   : > { %v539_v12 = vpop.xlane.xlu1 %538  ;;  %v518_v13 = vpop.xlane.xlu0 %517 }
 0x1cf   : > { %1607 = vrsqrt.f32 %v575_v8  ;;  %v567_v14 = vmul.f32 0.015625, %v539_v12  ;;  %v560_v15 = vmul.f32 0.015625, %v518_v13 }
 0x1d0   : > { %1609 = vrsqrt.f32 %v582_v9 }
 0x1d1   : > { %v583_v18 = vadd.f32 1e-05, %v567_v14  ;;  %v576_v19 = vadd.f32 1e-05, %v560_v15 }
 0x1d2   : > { %v521_v22 = vpop.xlane.xlu1 %520  ;;  %v542_v16 = vpop.xlane.xlu0 %541 }
 0x1d3   : > { %1611 = vrsqrt.f32 %v583_v18  ;;  %v561_v26 = vmul.f32 0.015625, %v521_v22  ;;  %v568_v27 = vmul.f32 0.015625, %v542_v16 }
 0x1d4   : > { %1613 = vrsqrt.f32 %v576_v19 }
 0x1d5   : > { %v1606_v30 = vpop.eup %1605  ;;  %v577_v31 = vadd.f32 1e-05, %v561_v26  ;;  %v584_v32 = vadd.f32 1e-05, %v568_v27 }
 0x1d6   : > { %v606_v33 = vmul.f32 %v1606_v30, %v2288_v36  ;;  %v545_v34 = vpop.xlane.xlu1 %544  ;;  %v524_v20 = vpop.xlane.xlu0 %523 }
 0x1d7   : > { %1615 = vrsqrt.f32 %v577_v31  ;;  %v569_v38 = vmul.f32 0.015625, %v545_v34  ;;  %v562_v39 = vmul.f32 0.015625, %v524_v20 }
 0x1d8   : > { %1617 = vrsqrt.f32 %v584_v32  ;;  %v628_v50 = vmul.f32 %v2381_v40, %v606_v33 }
 0x1d9   : > { %v1608_v41 = vpop.eup %1607  ;;  %v585_v42 = vadd.f32 1e-05, %v569_v38  ;;  %v578_v43 = vadd.f32 1e-05, %v562_v39 }
 0x1da   : > { %v1610_v46 = vpop.eup %1609  ;;  %v607_v24 = vmul.f32 %v1608_v41, %v2296_v44  ;;  %v527_v48 = vpop.xlane.xlu1 %526  ;;  %v650_v61 = vadd.f32 %v2386_v53, %v628_v50 }
 0x1db   : > { %v548_v49 = vpop.xlane.xlu0 %547  ;;  %v614_v36 = vmul.f32 %v1610_v46, %v2290_v37  ;;  %1619 = vrsqrt.f32 %v585_v42  ;;  %v563_v51 = vmul.f32 0.015625, %v527_v48 }
 0x1dc   : > { %v570_v52 = vmul.f32 0.015625, %v548_v49  ;;  %1621 = vrsqrt.f32 %v578_v43  ;;  %v629_v28 = vmul.f32 %v2381_v40, %v607_v24 }
 0x1dd   : > { %v1612_v29 = vpop.eup %1611  ;;  %v579_v56 = vadd.f32 1e-05, %v563_v51  ;;  %v636_v63 = vmul.f32 %v2381_v40, %v614_v36 }
 0x1de   : > { %v586_v57 = vadd.f32 1e-05, %v570_v52  ;;  %v1614_v58 = vpop.eup %1613  ;;  %v615_v44 = vmul.f32 %v1612_v29, %v2298_v45  ;;  %v551_v59 = vpop.xlane.xlu1 %550  ;;  %v651_v37 = vadd.f32 %v2386_v53, %v629_v28 }
 0x1df   : > { %v530_v60 = vpop.xlane.xlu0 %529  ;;  %v608_v2 = vmul.f32 %v1614_v58, %v2306_v54  ;;  %1623 = vrsqrt.f32 %v579_v56  ;;  %v571_v3 = vmul.f32 0.015625, %v551_v59  ;;  %v658_v15 = vadd.f32 %v2386_v53, %v636_v63 }
 0x1e0   : > { %v564_v4 = vmul.f32 0.015625, %v530_v60  ;;  %1625 = vrsqrt.f32 %v586_v57  ;;  %v666_v5 = vpack.c.bf16 %v651_v37, %v650_v61  ;;  %v637_v6 = vmul.f32 %v2381_v40, %v615_v44 }
 0x1e1   : > { %v1616_v7 = vpop.eup %1615  ;;  %v587_v8 = vadd.f32 1e-05, %v571_v3  ;;  %v630_v18 = vmul.f32 %v2381_v40, %v608_v2 }
 0x1e2   : > { %v580_v45 = vadd.f32 1e-05, %v564_v4  ;;  %v1618_v9 = vpop.eup %1617  ;;  %v609_v12 = vmul.f32 %v1616_v7, %v2308_v55  ;;  %v533_v13 = vpop.xlane.xlu1 %532  ;;  %1380 = vmatmul.mubr.msk.bf16.vlgmr.msra.gmra.mrb[0].mxu0 %vm412_vm0, %v666_v5  ;;  %v659_v54 = vadd.f32 %v2386_v53, %v637_v6 }
 0x1e3   : > { %v554_v14 = vpop.xlane.xlu0 %553  ;;  %v616_v19 = vmul.f32 %v1618_v9, %v2317_v0  ;;  %1627 = vrsqrt.f32 %v587_v8  ;;  %v565_v22 = vmul.f32 0.015625, %v533_v13  ;;  %800 = vmatprep.mubr.bf16.mxu0 %v1938_v62  ;;  %v652_v0 = vadd.f32 %v2386_v53, %v630_v18 }
 0x1e4   : > { %v572_v16 = vmul.f32 0.015625, %v554_v14  ;;  %1629 = vrsqrt.f32 %v580_v45  ;;  %v670_v26 = vpack.c.bf16 %v659_v54, %v658_v15  ;;  %v631_v55 = vmul.f32 %v2381_v40, %v609_v12  ;;  %v682_v54 = vld [vmem:[#allocation10] sm:$0x3] }
 0x1e5   : > { %v1620_v27 = vpop.eup %1619  ;;  %v581_v30 = vadd.f32 1e-05, %v565_v22  ;;  %v638_v38 = vmul.f32 %v2381_v40, %v616_v19  ;;  %v684_v13 = vlaneseq }
 0x1e6   : > { %v588_v31 = vadd.f32 1e-05, %v572_v16  ;;  %v1622_v32 = vpop.eup %1621  ;;  %v617_v33 = vmul.f32 %v1620_v27, %v2320_v1  ;;  %v557_v34 = vpop.xlane.xlu1 %556  ;;  %1384 = vmatmul.mubr.msk.bf16.vlgmr.msra.gmra.mrb[0].mxu1 %vm412_vm0, %v670_v26  ;;  %v653_v20 = vadd.f32 %v2386_v53, %v631_v55 }
 0x1e7   : > { %v610_v39 = vmul.f32 %v1622_v32, %v2329_v10  ;;  %1631 = vrsqrt.f32 %v581_v30  ;;  %v573_v41 = vmul.f32 0.015625, %v557_v34  ;;  %840 = vmatprep.mubr.bf16.mxu1 %v1938_v62  ;;  %v660_v49 = vadd.f32 %v2386_v53, %v638_v38 }
 0x1e8   : > { %1633 = vrsqrt.f32 %v588_v31  ;;  %v667_v42 = vpack.c.bf16 %v653_v20, %v652_v0  ;;  %v639_v43 = vmul.f32 %v2381_v40, %v617_v33  ;;  %v685_v14 = vshrl.u32 %v684_v13, 7 }
 0x1e9   : > { %v1624_v1 = vpop.eup %1623  ;;  %v589_v46 = vadd.f32 1e-05, %v573_v41  ;;  %v632_v10 = vmul.f32 %v2381_v40, %v610_v39 }
 0x1ea   : > { %v1626_v24 = vpop.eup %1625  ;;  %v611_v48 = vmul.f32 %v1624_v1, %v2332_v11  ;;  %1381 = vmatmul.mubr.msk.bf16.gmra.mrb[4].mxu0 %vm412_vm0, %v667_v42  ;;  %v661_v50 = vadd.f32 %v2386_v53, %v639_v43  ;;  %v686_v15 = vsub.s32 0, %v685_v14  ;;  %v690_v18 = vsub.s32 1, %v685_v14 }
 0x1eb   : > { %v618_v36 = vmul.f32 %v1626_v24, %v2341_v23  ;;  %1635 = vrsqrt.f32 %v589_v46  ;;  %810 = vmatprep.mubr.bf16.mxu0 %v1938_v62  ;;  %v654_v56 = vadd.f32 %v2386_v53, %v632_v10 }
 0x1ec   : > { %v671_v51 = vpack.c.bf16 %v661_v50, %v660_v49  ;;  %v633_v52 = vmul.f32 %v2381_v40, %v611_v48  ;;  %v2446_v19 = vrot.slane %v682_v54, %v686_v15 }
 0x1ed   : > { %v1628_v28 = vpop.eup %1627  ;;  %v640_v58 = vmul.f32 %v2381_v40, %v618_v36 }
 0x1ee   : > { %v1630_v29 = vpop.eup %1629  ;;  %v619_v11 = vmul.f32 %v1628_v28, %v2344_v17  ;;  %1385 = vmatmul.mubr.msk.bf16.gmra.mrb[4].mxu1 %vm412_vm0, %v671_v51  ;;  %v655_v57 = vadd.f32 %v2386_v53, %v633_v52 }
 0x1ef   : > { %v612_v23 = vmul.f32 %v1630_v29, %v2353_v35  ;;  %850 = vmatprep.mubr.bf16.mxu1 %v1938_v62  ;;  %v662_v17 = vadd.f32 %v2386_v53, %v640_v58 }
 0x1f0   : > { %v668_v44 = vpack.c.bf16 %v655_v57, %v654_v56  ;;  %v641_v59 = vmul.f32 %v2381_v40, %v619_v11 }
 0x1f1   : > { %v1632_v60 = vpop.eup %1631  ;;  %v634_v2 = vmul.f32 %v2381_v40, %v612_v23 }
 0x1f2   : > { %v1634_v61 = vpop.eup %1633  ;;  %v613_v37 = vmul.f32 %v1632_v60, %v2356_v21  ;;  %1382 = vmatmul.mubr.msk.bf16.gmra.mrb[8].mxu0 %vm412_vm0, %v668_v44  ;;  %v663_v63 = vadd.f32 %v2386_v53, %v641_v59 }
 0x1f3   : > { %v620_v3 = vmul.f32 %v1634_v61, %v2365_v47  ;;  %820 = vmatprep.mubr.bf16.mxu0 %v1938_v62  ;;  %v656_v21 = vadd.f32 %v2386_v53, %v634_v2 }
 0x1f4   : > { %v672_v35 = vpack.c.bf16 %v663_v63, %v662_v17  ;;  %v635_v4 = vmul.f32 %v2381_v40, %v613_v37 }
 0x1f5   : > { %v1636_v5 = vpop.eup %1635  ;;  %v642_v8 = vmul.f32 %v2381_v40, %v620_v3 }
 0x1f6   : > { %v621_v6 = vmul.f32 %v1636_v5, %v2368_v25  ;;  %1386 = vmatmul.mubr.msk.bf16.gmra.mrb[8].mxu1 %vm412_vm0, %v672_v35  ;;  %v657_v7 = vadd.f32 %v2386_v53, %v635_v4 }
 0x1f7   : > { %860 = vmatprep.mubr.bf16.mxu1 %v1938_v62  ;;  %v664_v9 = vadd.f32 %v2386_v53, %v642_v8  ;;  %v2448_v62 = vrot.slane %v682_v54, %v690_v18 }
 0x1f8   : > { %v669_v47 = vpack.c.bf16 %v657_v7, %v656_v21  ;;  %v643_v45 = vmul.f32 %v2381_v40, %v621_v6 }
 0x1fa   : > { %1383 = vmatmul.mubr.msk.bf16.gmra.mrb[12].mxu0 %vm412_vm0, %v669_v47  ;;  %v665_v25 = vadd.f32 %v2386_v53, %v643_v45 }
 0x1fc   : > { %v673_v12 = vpack.c.bf16 %v665_v25, %v664_v9 }
 0x1fe   : > { %1387 = vmatmul.mubr.msk.bf16.gmra.mrb[12].mxu1 %vm412_vm0, %v673_v12 }
 0x2b5   : > { %v792_v40 = vpop.f32.mrb[0].mxu0 }
 0x2b6   : > { %v793_v22 = vadd.f32 %v792_v40, %v2446_v19  ;;  %v794_v16 = vpop.f32.mrb[1].mxu0 }
 0x2b7   : > { %v795_v53 = vadd.f32 %v794_v16, %v2448_v62  ;;  %v796_v26 = vpop.f32.mrb[2].mxu0 }
 0x2b8   : > { %v1432_v55 = vpack.c.bf16 %v793_v22, %v793_v22  ;;  %v797_v27 = vadd.f32 %v796_v26, %v2446_v19  ;;  %v798_v30 = vpop.f32.mrb[3].mxu0 }
 0x2b9   : > { %v1448_v31 = vpack.c.bf16 %v795_v53, %v795_v53  ;;  %v799_v32 = vadd.f32 %v798_v30, %v2448_v62  ;;  %v832_v33 = vpop.f32.mrb[0].mxu1 }
 0x2ba   : > { %936 = vst.msk [vmem:[%s2458_s11] sm:$0xf] %vm935_vm1, %v1432_v55  ;;  %v1433_v34 = vpack.c.bf16 %v797_v27, %v797_v27  ;;  %v833_v0 = vadd.f32 %v832_v33, %v2446_v19  ;;  %952 = vrot.lane.b32.xlu0 %v1432_v55, %s1939_s10  ;;  %v834_v20 = vpop.f32.mrb[1].mxu1 }
 0x2bb   : > { %1080 = vst.msk [vmem:[%s2465_s15] sm:$0xf] %vm935_vm1, %v1448_v31  ;;  %v1449_v38 = vpack.c.bf16 %v799_v32, %v799_v32  ;;  %v835_v39 = vadd.f32 %v834_v20, %v2448_v62  ;;  %v836_v41 = vpop.f32.mrb[2].mxu1 }
 0x2bc   : > { %937 = vst.msk [vmem:[%s2458_s11 + $0x4] sm:$0xf] %vm935_vm1, %v1433_v34  ;;  %v1440_v42 = vpack.c.bf16 %v833_v0, %v833_v0  ;;  %v837_v43 = vadd.f32 %v836_v41, %v2446_v19  ;;  %954 = vrot.lane.b32.xlu1 %v1433_v34, %s1939_s10  ;;  %v838_v1 = vpop.f32.mrb[3].mxu1 }
 0x2bd   : > { %1081 = vst.msk [vmem:[%s2465_s15 + $0x4] sm:$0xf] %vm935_vm1, %v1449_v38  ;;  %v1456_v46 = vpack.c.bf16 %v835_v39, %v835_v39  ;;  %v839_v24 = vadd.f32 %v838_v1, %v2448_v62  ;;  %v802_v48 = vpop.f32.mrb[4].mxu0 }
 0x2be   : > { %944 = vst.msk [vmem:[%s2458_s11 + $0x20] sm:$0xf] %vm935_vm1, %v1440_v42  ;;  %v1441_v49 = vpack.c.bf16 %v837_v43, %v837_v43  ;;  %v803_v50 = vadd.f32 %v802_v48, %v2446_v19  ;;  %968 = vrot.lane.b32.xlu0 %v1440_v42, %s1939_s10  ;;  %v804_v10 = vpop.f32.mrb[5].mxu0 }
 0x2bf   : > { %1088 = vst.msk [vmem:[%s2465_s15 + $0x20] sm:$0xf] %vm935_vm1, %v1456_v46  ;;  %v1457_v36 = vpack.c.bf16 %v839_v24, %v839_v24  ;;  %v805_v51 = vadd.f32 %v804_v10, %v2448_v62  ;;  %v806_v52 = vpop.f32.mrb[6].mxu0 }
 0x2c0   : > { %945 = vst.msk [vmem:[%s2458_s11 + $0x24] sm:$0xf] %vm935_vm1, %v1441_v49  ;;  %v1434_v28 = vpack.c.bf16 %v803_v50, %v803_v50  ;;  %v807_v29 = vadd.f32 %v806_v52, %v2446_v19  ;;  %970 = vrot.lane.b32.xlu1 %v1441_v49, %s1939_s10  ;;  %v808_v11 = vpop.f32.mrb[7].mxu0 }
 0x2c1   : > { %1089 = vst.msk [vmem:[%s2465_s15 + $0x24] sm:$0xf] %vm935_vm1, %v1457_v36  ;;  %v1450_v56 = vpack.c.bf16 %v805_v51, %v805_v51  ;;  %v809_v57 = vadd.f32 %v808_v11, %v2448_v62  ;;  %v842_v58 = vpop.f32.mrb[4].mxu1 }
 0x2c2   : > { %938 = vst.msk [vmem:[%s2458_s11 + $0x8] sm:$0xf] %vm935_vm1, %v1434_v28  ;;  %v1435_v23 = vpack.c.bf16 %v807_v29, %v807_v29  ;;  %v843_v44 = vadd.f32 %v842_v58, %v2446_v19  ;;  %v844_v59 = vpop.f32.mrb[5].mxu1 }
 0x2c3   : > { %1082 = vst.msk [vmem:[%s2465_s15 + $0x8] sm:$0xf] %vm935_vm1, %v1450_v56  ;;  %v1451_v60 = vpack.c.bf16 %v809_v57, %v809_v57  ;;  %v845_v61 = vadd.f32 %v844_v59, %v2448_v62  ;;  %v846_v37 = vpop.f32.mrb[6].mxu1 }
 0x2c4   : > { %939 = vst.msk [vmem:[%s2458_s11 + $0xc] sm:$0xf] %vm935_vm1, %v1435_v23  ;;  %v1442_v17 = vpack.c.bf16 %v843_v44, %v843_v44  ;;  %v847_v63 = vadd.f32 %v846_v37, %v2446_v19  ;;  %956 = vrot.lane.b32.xlu1 %v1434_v28, %s1939_s10  ;;  %v848_v2 = vpop.f32.mrb[7].mxu1 }
 0x2c5   : > { %1083 = vst.msk [vmem:[%s2465_s15 + $0xc] sm:$0xf] %vm935_vm1, %v1451_v60  ;;  %v1458_v3 = vpack.c.bf16 %v845_v61, %v845_v61  ;;  %v849_v35 = vadd.f32 %v848_v2, %v2448_v62  ;;  %v812_v4 = vpop.f32.mrb[8].mxu0 }
 0x2c6   : > { %946 = vst.msk [vmem:[%s2458_s11 + $0x28] sm:$0xf] %vm935_vm1, %v1442_v17  ;;  %v1443_v5 = vpack.c.bf16 %v847_v63, %v847_v63  ;;  %v813_v6 = vadd.f32 %v812_v4, %v2446_v19  ;;  %972 = vrot.lane.b32.xlu0 %v1442_v17, %s1939_s10  ;;  %v814_v21 = vpop.f32.mrb[9].mxu0 }
 0x2c7   : > { %1090 = vst.msk [vmem:[%s2465_s15 + $0x28] sm:$0xf] %vm935_vm1, %v1458_v3  ;;  %v1459_v7 = vpack.c.bf16 %v849_v35, %v849_v35  ;;  %v815_v8 = vadd.f32 %v814_v21, %v2448_v62  ;;  %v816_v47 = vpop.f32.mrb[10].mxu0 }
 0x2c8   : > { %947 = vst.msk [vmem:[%s2458_s11 + $0x2c] sm:$0xf] %vm935_vm1, %v1443_v5  ;;  %v1436_v45 = vpack.c.bf16 %v813_v6, %v813_v6  ;;  %v817_v9 = vadd.f32 %v816_v47, %v2446_v19  ;;  %958 = vrot.lane.b32.xlu1 %v1435_v23, %s1939_s10  ;;  %v818_v25 = vpop.f32.mrb[11].mxu0 }
 0x2c9   : > { %1091 = vst.msk [vmem:[%s2465_s15 + $0x2c] sm:$0xf] %vm935_vm1, %v1459_v7  ;;  %v1452_v12 = vpack.c.bf16 %v815_v8, %v815_v8  ;;  %v819_v13 = vadd.f32 %v818_v25, %v2448_v62  ;;  %v852_v14 = vpop.f32.mrb[8].mxu1 }
 0x2ca   : > { %940 = vst.msk [vmem:[%s2458_s11 + $0x10] sm:$0xf] %vm935_vm1, %v1436_v45  ;;  %v1437_v15 = vpack.c.bf16 %v817_v9, %v817_v9  ;;  %v853_v54 = vadd.f32 %v852_v14, %v2446_v19  ;;  %960 = vrot.lane.b32.xlu0 %v1436_v45, %s1939_s10  ;;  %v854_v18 = vpop.f32.mrb[9].mxu1 }
 0x2cb   : > { %1084 = vst.msk [vmem:[%s2465_s15 + $0x10] sm:$0xf] %vm935_vm1, %v1452_v12  ;;  %v1453_v40 = vpack.c.bf16 %v819_v13, %v819_v13  ;;  %v855_v22 = vadd.f32 %v854_v18, %v2448_v62  ;;  %v856_v16 = vpop.f32.mrb[10].mxu1 }
 0x2cc   : > { %941 = vst.msk [vmem:[%s2458_s11 + $0x14] sm:$0xf] %vm935_vm1, %v1437_v15  ;;  %v1444_v53 = vpack.c.bf16 %v853_v54, %v853_v54  ;;  %v857_v26 = vadd.f32 %v856_v16, %v2446_v19  ;;  %974 = vrot.lane.b32.xlu1 %v1443_v5, %s1939_s10  ;;  %v858_v55 = vpop.f32.mrb[11].mxu1 }
 0x2cd   : > { %1085 = vst.msk [vmem:[%s2465_s15 + $0x14] sm:$0xf] %vm935_vm1, %v1453_v40  ;;  %v1460_v27 = vpack.c.bf16 %v855_v22, %v855_v22  ;;  %v859_v30 = vadd.f32 %v858_v55, %v2448_v62  ;;  %v822_v31 = vpop.f32.mrb[12].mxu0 }
 0x2ce   : > { %948 = vst.msk [vmem:[%s2458_s11 + $0x30] sm:$0xf] %vm935_vm1, %v1444_v53  ;;  %v1445_v32 = vpack.c.bf16 %v857_v26, %v857_v26  ;;  %v823_v33 = vadd.f32 %v822_v31, %v2446_v19  ;;  %976 = vrot.lane.b32.xlu0 %v1444_v53, %s1939_s10  ;;  %v824_v34 = vpop.f32.mrb[13].mxu0 }
 0x2cf   : > { %1092 = vst.msk [vmem:[%s2465_s15 + $0x30] sm:$0xf] %vm935_vm1, %v1460_v27  ;;  %v1461_v0 = vpack.c.bf16 %v859_v30, %v859_v30  ;;  %v825_v20 = vadd.f32 %v824_v34, %v2448_v62  ;;  %v826_v38 = vpop.f32.mrb[14].mxu0 }
 0x2d0   : > { %949 = vst.msk [vmem:[%s2458_s11 + $0x34] sm:$0xf] %vm935_vm1, %v1445_v32  ;;  %v1438_v39 = vpack.c.bf16 %v823_v33, %v823_v33  ;;  %v827_v41 = vadd.f32 %v826_v38, %v2446_v19  ;;  %962 = vrot.lane.b32.xlu1 %v1437_v15, %s1939_s10  ;;  %v828_v42 = vpop.f32.mrb[15].mxu0 }
 0x2d1   : > { %1093 = vst.msk [vmem:[%s2465_s15 + $0x34] sm:$0xf] %vm935_vm1, %v1461_v0  ;;  %v1454_v43 = vpack.c.bf16 %v825_v20, %v825_v20  ;;  %v829_v1 = vadd.f32 %v828_v42, %v2448_v62  ;;  %v862_v46 = vpop.f32.mrb[12].mxu1 }
 0x2d2   : > { %942 = vst.msk [vmem:[%s2458_s11 + $0x18] sm:$0xf] %vm935_vm1, %v1438_v39  ;;  %v1439_v24 = vpack.c.bf16 %v827_v41, %v827_v41  ;;  %v863_v48 = vadd.f32 %v862_v46, %v2446_v19  ;;  %964 = vrot.lane.b32.xlu0 %v1438_v39, %s1939_s10  ;;  %v864_v49 = vpop.f32.mrb[13].mxu1 }
 0x2d3   : > { %1086 = vst.msk [vmem:[%s2465_s15 + $0x18] sm:$0xf] %vm935_vm1, %v1454_v43  ;;  %v1455_v50 = vpack.c.bf16 %v829_v1, %v829_v1  ;;  %v865_v10 = vadd.f32 %v864_v49, %v2448_v62  ;;  %v866_v36 = vpop.f32.mrb[14].mxu1 }
 0x2d4   : > { %943 = vst.msk [vmem:[%s2458_s11 + $0x1c] sm:$0xf] %vm935_vm1, %v1439_v24  ;;  %v1446_v51 = vpack.c.bf16 %v863_v48, %v863_v48  ;;  %v867_v52 = vadd.f32 %v866_v36, %v2446_v19  ;;  %978 = vrot.lane.b32.xlu1 %v1445_v32, %s1939_s10  ;;  %v868_v28 = vpop.f32.mrb[15].mxu1 }
 0x2d5   : > { %1087 = vst.msk [vmem:[%s2465_s15 + $0x1c] sm:$0xf] %vm935_vm1, %v1455_v50  ;;  %v1462_v29 = vpack.c.bf16 %v865_v10, %v865_v10  ;;  %v869_v11 = vadd.f32 %v868_v28, %v2448_v62 }
 0x2d6   : > { %950 = vst.msk [vmem:[%s2458_s11 + $0x38] sm:$0xf] %vm935_vm1, %v1446_v51  ;;  %v1447_v56 = vpack.c.bf16 %v867_v52, %v867_v52  ;;  %980 = vrot.lane.b32.xlu0 %v1446_v51, %s1939_s10 }
 0x2d7   : > { %1094 = vst.msk [vmem:[%s2465_s15 + $0x38] sm:$0xf] %vm935_vm1, %v1462_v29  ;;  %v1463_v19 = vpack.c.bf16 %v869_v11, %v869_v11 }
 0x2d8   : > { %951 = vst.msk [vmem:[%s2458_s11 + $0x3c] sm:$0xf] %vm935_vm1, %v1447_v56  ;;  %966 = vrot.lane.b32.xlu1 %v1439_v24, %s1939_s10 }
 0x2d9   : > { %1095 = vst.msk [vmem:[%s2465_s15 + $0x3c] sm:$0xf] %vm935_vm1, %v1463_v19 }
 0x2da   : > { %1792 = shalt.err (!%p1789_p9)
}
 0x2db   : > { %s1793_s11 = scalar_lea.hbm %s2571_s19, 1024  ;;  %s1797_s18 = scalar_lea.hbm %s2746_s5, 2048 }
 0x2dc   : > { %p1794_p3 = scmp.ne.s32.totalorder %s2571_s19, %s1793_s11  ;;  %p1798_p12 = scmp.lt.u32.totalorder %s2571_s19, %s2746_s5 }
 0x2dd   : > { %p1799_p2 = scmp.lt.u32.totalorder %s1797_s18, %s1793_s11  ;;  %p1801_p4 = scmp.lt.u32.totalorder %s1793_s11, %s2571_s19 }
 0x2de   : > { %p1795_p7 = pnand %p1794_p3, %p2150_p6 }
 0x2df   : > { %p1800_p1 = por %p1799_p2, %p1798_p12 }
 0x2e0   : > { %p1796_p11 = pneg %p1795_p7 }
 0x2e1   : > { %p1802_p8 = por %p1801_p4, %p1800_p1 }
 0x2e3   : > { %p1803_p0 = pnand %p1802_p8, %p1796_p11 }
 0x2e5   : > { %1806 = shalt.err (!%p1803_p0)
}
 0x2e6   : > { %s1941_s1 = smov 4   ;;  %s2773_s14 = scalar_lea.sflag [#allocation4], %s2208_s13  ;;  %982 = vrot.lane.b32.xlu1 %v1447_v56, %s1939_s10 }
 0x2e7   : > { %1493 = dma.vmem_to_hbm [thread:$0]  (%p2150_p6), %s2573_s23, 1024, %s2571_s19, %s2773_s14, %s1939_s10, %s1939_s10, %s1941_s1  }
 0x2e8   : > { %s2611_s22 = scalar_lea.vmem [#allocation12], %s2451_s9  ;;  %s1101_s13 = sand.u32 1, %s2015_s30  }
 0x2e9   : > { %s1140_s9 = sshll.u32 %s2611_s22, 4  ;;  %s1158_s23 = sshll.u32 %s2465_s15, 4  ;;  %s2652_s9 = int_to_ptr.vmem [resolvable:$true] %s1140_s9  ;;  %s2660_s23 = int_to_ptr.vmem [resolvable:$true] %s1158_s23 }
 0x2ea   : > { %s2650_s27 = scalar_lea.hbm %s2747_s6, %s2554_s8  ;;  %s2658_s30 = scalar_lea.hbm %s2748_s7, %s2554_s8 }
 0x2eb   : > { %s2664_s15 = scalar_lea.sflag [#allocation13], %s1101_s13  ;;  %s1807_s17 = scalar_lea.vmem %s2652_s9, 1024 }
 0x2ec   : > { %p1808_p5 = scmp.ne.s32.totalorder %s2652_s9, %s1807_s17  ;;  %s1942_s14 = smov [#allocation12]  }
 0x2ed   : > { %s1811_s19 = sshll.u32 %s1942_s14, 4  ;;  %s1812_s19 = int_to_ptr.vmem [resolvable:$false] %s1811_s19 }
 0x2ee   : > { %p1809_p10 = pnand %p1808_p5, %p2150_p6  ;;  %s1813_s11 = scalar_lea.vmem %s1812_s19, 2048 }
 0x2ef   : > { %p1814_p9 = scmp.lt.s32.totalorder %s2652_s9, %s1812_s19  ;;  %p1815_p3 = scmp.lt.s32.totalorder %s1813_s11, %s1807_s17 }
 0x2f0   : > { %p1810_p13 = pneg %p1809_p10 }
 0x2f1   : > { %p1816_p7 = por %p1815_p3, %p1814_p9 }
 0x2f3   : > { %p1817_p11 = pnand %p1816_p7, %p1810_p13 }
 0x32c   : > { %v953_v62 = vpop.permute.xlu0 %952 }
 0x32d   : > { %1000 = vst.msk [vmem:[%s2611_s22] sm:$0xf] %vm935_vm1, %v953_v62 }
 0x32e   : > { %v955_v57 = vpop.permute.xlu1 %954 }
 0x32f   : > { %1001 = vst.msk [vmem:[%s2611_s22 + $0x4] sm:$0xf] %vm935_vm1, %v955_v57 }
 0x330   : > { %v969_v58 = vpop.permute.xlu0 %968 }
 0x331   : > { %1008 = vst.msk [vmem:[%s2611_s22 + $0x20] sm:$0xf] %vm935_vm1, %v969_v58 }
 0x332   : > { %v971_v23 = vpop.permute.xlu1 %970 }
 0x333   : > { %1009 = vst.msk [vmem:[%s2611_s22 + $0x24] sm:$0xf] %vm935_vm1, %v971_v23 }
 0x336   : > { %v957_v44 = vpop.permute.xlu1 %956 }
 0x337   : > { %1002 = vst.msk [vmem:[%s2611_s22 + $0x8] sm:$0xf] %vm935_vm1, %v957_v44 }
 0x338   : > { %v973_v59 = vpop.permute.xlu0 %972 }
 0x339   : > { %1010 = vst.msk [vmem:[%s2611_s22 + $0x28] sm:$0xf] %vm935_vm1, %v973_v59 }
 0x33a   : > { %v959_v60 = vpop.permute.xlu1 %958 }
 0x33b   : > { %1003 = vst.msk [vmem:[%s2611_s22 + $0xc] sm:$0xf] %vm935_vm1, %v959_v60 }
 0x33c   : > { %v961_v61 = vpop.permute.xlu0 %960 }
 0x33d   : > { %1004 = vst.msk [vmem:[%s2611_s22 + $0x10] sm:$0xf] %vm935_vm1, %v961_v61 }
 0x33e   : > { %v975_v37 = vpop.permute.xlu1 %974 }
 0x33f   : > { %1011 = vst.msk [vmem:[%s2611_s22 + $0x2c] sm:$0xf] %vm935_vm1, %v975_v37 }
 0x340   : > { %v977_v17 = vpop.permute.xlu0 %976 }
 0x341   : > { %1012 = vst.msk [vmem:[%s2611_s22 + $0x30] sm:$0xf] %vm935_vm1, %v977_v17 }
 0x342   : > { %v963_v63 = vpop.permute.xlu1 %962 }
 0x343   : > { %1005 = vst.msk [vmem:[%s2611_s22 + $0x14] sm:$0xf] %vm935_vm1, %v963_v63 }
 0x344   : > { %v965_v2 = vpop.permute.xlu0 %964 }
 0x345   : > { %1006 = vst.msk [vmem:[%s2611_s22 + $0x18] sm:$0xf] %vm935_vm1, %v965_v2 }
 0x346   : > { %v979_v3 = vpop.permute.xlu1 %978 }
 0x347   : > { %1013 = vst.msk [vmem:[%s2611_s22 + $0x34] sm:$0xf] %vm935_vm1, %v979_v3 }
 0x348   : > { %v981_v35 = vpop.permute.xlu0 %980 }
 0x349   : > { %1014 = vst.msk [vmem:[%s2611_s22 + $0x38] sm:$0xf] %vm935_vm1, %v981_v35 }
 0x34a   : > { %v967_v4 = vpop.permute.xlu1 %966 }
 0x34b   : > { %1007 = vst.msk [vmem:[%s2611_s22 + $0x1c] sm:$0xf] %vm935_vm1, %v967_v4 }
 0x358   : > { %v983_v5 = vpop.permute.xlu1 %982 }
 0x359   : > { %1015 = vst.msk [vmem:[%s2611_s22 + $0x3c] sm:$0xf] %vm935_vm1, %v983_v5 }
 0x35a   : > { %1820 = shalt.err (!%p1817_p11)
}
 0x35b   : > { %s1821_s8 = scalar_lea.hbm %s2650_s27, 1024  ;;  %s1825_s21 = scalar_lea.hbm %s2747_s6, 2048 }
 0x35c   : > { %p1822_p12 = scmp.ne.s32.totalorder %s2650_s27, %s1821_s8  ;;  %p1826_p4 = scmp.lt.u32.totalorder %s2650_s27, %s2747_s6 }
 0x35d   : > { %p1827_p8 = scmp.lt.u32.totalorder %s1825_s21, %s1821_s8  ;;  %p1829_p5 = scmp.lt.u32.totalorder %s1821_s8, %s2650_s27 }
 0x35e   : > { %p1823_p2 = pnand %p1822_p12, %p2150_p6 }
 0x35f   : > { %p1828_p0 = por %p1827_p8, %p1826_p4 }
 0x360   : > { %p1824_p1 = pneg %p1823_p2 }
 0x361   : > { %p1830_p10 = por %p1829_p5, %p1828_p0 }
 0x363   : > { %p1831_p13 = pnand %p1830_p10, %p1824_p1 }
 0x365   : > { %1834 = shalt.err (!%p1831_p13)
}
 0x366   : > { %1494 = dma.vmem_to_hbm [thread:$0]  (%p2150_p6), %s2652_s9, 1024, %s2650_s27, %s2664_s15, %s1939_s10, %s1939_s10, %s1941_s1  }
 0x367   : > { %s1835_s17 = scalar_lea.vmem %s2660_s23, 1024  ;;  %s1943_s19 = smov [#allocation14]  }
 0x368   : > { %p1836_p9 = scmp.ne.s32.totalorder %s2660_s23, %s1835_s17  ;;  %s1839_s11 = sshll.u32 %s1943_s19, 4  ;;  %s1840_s11 = int_to_ptr.vmem [resolvable:$false] %s1839_s11 }
 0x369   : > { %s1841_s8 = scalar_lea.vmem %s1840_s11, 2048  ;;  %p1842_p11 = scmp.lt.s32.totalorder %s2660_s23, %s1840_s11 }
 0x36a   : > { %p1837_p3 = pnand %p1836_p9, %p2150_p6  ;;  %p1843_p12 = scmp.lt.s32.totalorder %s1841_s8, %s1835_s17 }
 0x36c   : > { %p1838_p7 = pneg %p1837_p3  ;;  %p1844_p2 = por %p1843_p12, %p1842_p11 }
 0x36e   : > { %p1845_p1 = pnand %p1844_p2, %p1838_p7 }
 0x370   : > { %1848 = shalt.err (!%p1845_p1)
}
 0x371   : > { %s1849_s9 = scalar_lea.hbm %s2658_s30, 1024  ;;  %s1853_s13 = scalar_lea.hbm %s2748_s7, 2048 }
 0x372   : > { %p1850_p4 = scmp.ne.s32.totalorder %s2658_s30, %s1849_s9  ;;  %p1854_p5 = scmp.lt.u32.totalorder %s2658_s30, %s2748_s7 }
 0x373   : > { %p1855_p10 = scmp.lt.u32.totalorder %s1853_s13, %s1849_s9  ;;  %p1857_p9 = scmp.lt.u32.totalorder %s1849_s9, %s2658_s30 }
 0x374   : > { %p1851_p8 = pnand %p1850_p4, %p2150_p6 }
 0x375   : > { %p1856_p13 = por %p1855_p10, %p1854_p5 }
 0x376   : > { %p1852_p0 = pneg %p1851_p8 }
 0x377   : > { %p1858_p3 = por %p1857_p9, %p1856_p13 }
 0x379   : > { %p1859_p7 = pnand %p1858_p3, %p1852_p0 }
 0x37b   : > { %1862 = shalt.err (!%p1859_p7)
}
 0x37c   : > { %1495 = dma.vmem_to_hbm [thread:$0]  (%p2150_p6), %s2660_s23, 1024, %s2658_s30, %s2664_s15, %s1939_s10, %s1939_s10, %s1941_s1  }
 0x37d PF: > { %s2774_s14 = sld [smem:[#allocation20_spill]]  ;;  %s1173_s17 = sand.u32 1, %s1909_s24  }
 0x37e   : > { %p2776_p12 = scmp.ge.s32.totalorder %s1929_s29, 2  ;;  %s1174_s19 = scalar_lea.sflag [#allocation4], %s1173_s17 }
 0x383   : > { %p2775_p11 = scmp.ne.s32.totalorder %s2774_s14, 0 }
 0x385   : > { %p1517_p2 = pnand %p2776_p12, %p2775_p11 }
 0x387   : > { %1900 = dma.done.wait (!%p1517_p2), %s1174_s19, 1024  }
 0x388   : > { %1902 = vsyncadd (!%p1517_p2), %s1174_s19, 4294966272  ;;  %s2777_s16 = sadd.s32 4294967294, %s1929_s29  }
 0x389   : > { %s1182_s11 = sand.u32 1, %s2777_s16  }
 0x38a   : > { %s1183_s8 = scalar_lea.sflag [#allocation13], %s1182_s11 }
 0x38b   : > { %1904 = dma.done.wait (!%p1517_p2), %s1183_s8, 2048  }
 0x38c   : > { %1906 = vsyncadd (!%p1517_p2), %s1183_s8, 4294965248  ;;  %s29_s29 = sadd.s32 1, %s1929_s29   ;;  %s2778_s24 = smov %s1913_s25 }
 0x38d   : > { %p26_p6 = scmp.ge.s32.totalorder %s29_s29, 4   ;;  %s2779_s25 = smov %s1917_s26 }
 0x38e   : > { %s2780_s26 = smov %s2159_s20  ;;  %s2781_s27 = smov %s1925_s28 }
 0x38f   : > { %s2782_s28 = smov %s2784_s12  ;;  %28 = sbr.rel (!%p26_p6) target bundleno = 12 (0xc), region = 133 }
 0x396   :  { %1197 = vsyncpa [#allocation3], 1 }
 0x397   :  { %1199 = vsyncpa [#allocation3 + $0x1], 1 }
 0x398   :  { %1200 = vsyncpa [#allocation6], 1 }
 0x399   :  { %1201 = vsyncpa [#allocation9], 1 }
 0x39a   :  { %1202 = vsyncpa [#allocation4], 1 }
 0x39b   :  { %1204 = vsyncpa [#allocation4 + $0x1], 1 }
 0x39c   :  { %1205 = vsyncpa [#allocation13], 1 }
 0x39d   :  { %1207 = vsyncpa [#allocation13 + $0x1], 1 }

</bundles_post_ra>
